<compile_context>
chip_gen: v6e
topology: v6e:2x2x1
jax: 0.10.0
libtpu: 0.0.40
codegen_flags: <defaults>
</compile_context>

<pallas_src>
import functools

import numpy as np
import jax
import jax.numpy as jnp
from jax.experimental import pallas as pl
from jax.experimental.pallas import tpu as pltpu


ENTITY_DIM = 10  # pos(2) + velocity(2) + gaze(2) + color(3) + shape(1)
STATS_W = 128    # lane-dense per-step stats row


def _const_spec(shape):
    """Full-array block whose index never changes -> DMA'd once for the whole grid."""
    return pl.BlockSpec(shape, lambda t: (0,) * len(shape))


# --------------------------------------------------------------------------- #
# Single-kernel T-step rollout
# --------------------------------------------------------------------------- #
def _rollout_kernel(
    # weights (VMEM-resident for the whole rollout)
    pw1_ref, pb1_ref, pw2_ref, pb2_ref,          # physical MLP
    uw_ref, ub_ref,                              # fused utterance cell [wf|wm],[bf|bm]
    aw1_ref, ab1_ref, awh_ref, abh_ref,          # action trunk + packed heads
    # structural 0/1 constants (index plumbing as matmuls)
    rrep_ref, dmat_ref, rotc_ref, se_ref, sa_ref, ru_ref, pga_ref, selag_ref,
    goals_ref,
    # initial state (read only at t == 0)
    ent0_ref, utt0_ref, umem0_ref, fmem0_ref,
    # per-timestep Gaussian noise, (G, 4) block per step
    noise_ref,
    # outputs: carried state (constant index -> VMEM resident) + per-step stats
    ent_ref, utt_ref, umem_ref, fmem_ref, stats_ref,
    *, hidden, vocab, sigma, log_sigma, log_2pi):
    f32 = jnp.float32
    t = pl.program_id(0)

    @pl.when(t == 0)
    def _init():
        ent_ref[...] = ent0_ref[...]
        utt_ref[...] = utt0_ref[...]
        umem_ref[...] = umem0_ref[...]
        fmem_ref[...] = fmem0_ref[...]

    ent = ent_ref[...]        # (B*E, 10)  batch-major entity table (agents + landmarks)
    utt = utt_ref[...]        # (G, V)     agent-major utterances, G = A*B
    umem = umem_ref[...]      # (G*A, MEM) agent-major (listener, speaker) memories
    fmem = fmem_ref[...]      # (G, MEM)   agent-major final memories
    goals = goals_ref[...]    # (G, 4)

    # ---- observation build + PhysicalProcessor + entity SoftmaxPooling -------------
    # obs rows are a replication of entity rows; relative positions are a signed
    # selection (entity - observer) rotated by per-row constant coefficients.
    ent_rep = jnp.dot(rrep_ref[...], ent, preferred_element_type=f32)     # (G*E, 10)
    dfull = jnp.dot(dmat_ref[...], ent, preferred_element_type=f32)       # (G*E, 10)
    rc = rotc_ref[...]                                                    # (G*E, 4)
    rel0 = dfull[:, 0:1] * rc[:, 0:1] + dfull[:, 1:2] * rc[:, 1:2]
    rel1 = dfull[:, 0:1] * rc[:, 2:3] + dfull[:, 1:2] * rc[:, 3:4]
    w1 = pw1_ref[...]
    h1 = jnp.maximum(
        rel0 * w1[0:1, :] + rel1 * w1[1:2, :]
        + jnp.dot(ent_rep[:, 2:], w1[2:, :], preferred_element_type=f32)
        + pb1_ref[...], 0.0)                                              # (G*E, H)
    pfeat = jnp.dot(h1, pw2_ref[...], preferred_element_type=f32) + pb2_ref[...]
    # SoftmaxPooling over entities within each group via block-diag matmuls.
    # A shared per-column max is exact for the per-group softmax (constant cancels);
    # the clamp only guards exp() underflow in pathological cases.
    pe = jnp.exp(jnp.maximum(pfeat - jnp.max(pfeat, axis=0, keepdims=True), -80.0))
    pnum = jnp.dot(se_ref[...], pe * pfeat, preferred_element_type=f32)   # (G, H)
    pden = jnp.dot(se_ref[...], pe, preferred_element_type=f32)
    pf = pnum * pl.reciprocal(pden, approx=True)

    # ---- UtteranceProcessor (fused wf|wm) + speaker SoftmaxPooling ------------------
    utt_rep = jnp.dot(ru_ref[...], utt, preferred_element_type=f32)       # (G*A, V)
    uin = jnp.concatenate([utt_rep, umem], axis=-1)                       # (G*A, V+MEM)
    ucell = jnp.tanh(
        jnp.dot(uin, uw_ref[...], preferred_element_type=f32) + ub_ref[...])
    ufeat = ucell[:, :hidden]                                             # (G*A, H)
    new_umem = ucell[:, hidden:]                                          # (G*A, MEM)
    ue = jnp.exp(ufeat - jnp.max(ufeat, axis=0, keepdims=True))
    unum = jnp.dot(sa_ref[...], ue * ufeat, preferred_element_type=f32)   # (G, H)
    uden = jnp.dot(sa_ref[...], ue, preferred_element_type=f32)
    uf = unum * pl.reciprocal(uden, approx=True)

    # ---- ActionProcessor: ReLU trunk + ONE packed head matmul ----------------------
    x = jnp.concatenate([goals, fmem, pf, uf], axis=-1)                   # (G, 4+MEM+2H)
    ah = jnp.maximum(
        jnp.dot(x, aw1_ref[...], preferred_element_type=f32) + ab1_ref[...], 0.0)
    raw = jnp.dot(ah, awh_ref[...], preferred_element_type=f32) + abh_ref[...]
    col = jax.lax.broadcasted_iota(jnp.int32, raw.shape, 1)
    umask = jnp.logical_and(col >= 4, col < 4 + vocab)
    logits = jnp.where(umask, raw, -1e30)
    le = jnp.exp(logits - jnp.max(logits, axis=-1, keepdims=True))
    usm = le * pl.reciprocal(jnp.sum(le, axis=-1, keepdims=True), approx=True)
    heads = jnp.where(umask, usm, jnp.tanh(raw))      # [v(2)|gaze(2)|utt(V)|mem(MEM)]

    new_utt = heads[:, 4:4 + vocab]
    new_fmem = heads[:, 4 + vocab:]

    nz = noise_ref[...]                                                   # (G, 4)
    eps_v = nz[:, 0:2]
    act = heads[:, 0:4] + sigma * nz                  # sampled [v | gaze], (G, 4)

    # ---- scatter agent updates back into the batch-major entity table --------------
    upd = jnp.dot(pga_ref[...], act, preferred_element_type=f32)          # (B*E, 4)
    v_be = upd[:, 0:2]
    gz_be = upd[:, 2:4]
    # pos += v ; vel = v ; gaze += gaze_action ; (landmark rows have zero updates)
    new_ent = ent + jnp.concatenate(
        [v_be, v_be - ent[:, 2:4], gz_be, jnp.zeros_like(ent[:, 6:])], axis=-1)

    ent_ref[...] = new_ent
    utt_ref[...] = new_utt
    umem_ref[...] = new_umem
    fmem_ref[...] = new_fmem

    # ---- per-step stats (lane-dense row): lane0 = |pos-goal|^2, lane1 = v log-prob --
    new_pos_am = jnp.dot(selag_ref[...], new_ent, preferred_element_type=f32)[:, 0:2]
    diff = new_pos_am - goals[:, 2:4]
    sq = jnp.sum(diff * diff, axis=-1, keepdims=True)                     # (G, 1)
    lp = jnp.sum(-0.5 * (eps_v * eps_v) - log_sigma - 0.5 * log_2pi,
                 axis=-1, keepdims=True)                                  # (G, 1)
    lane = jax.lax.broadcasted_iota(jnp.int32, stats_ref.shape, 1)
    stats_ref[...] = jnp.where(lane == 0, sq, jnp.where(lane == 1, lp, 0.0))


# --------------------------------------------------------------------------- #
# World (JAX glue around the single rollout kernel)
# --------------------------------------------------------------------------- #
class World:
    def __init__(self, config, key):
        wc = config["world"]
        self.height = wc["height"]
        self.width = wc["width"]
        self.num_agents = wc["num_agents"]
        self.num_landmarks = wc["num_landmarks"]
        self.num_shapes = wc["num_shapes"]
        self.batch_size = wc["batch_size"]
        self.memory_size = wc["memory_size"]
        self.timesteps = wc["timesteps"]
        self.vocab_size = wc["vocab_size"]
        self.delta_t = wc["delta_t"]    # unused, faithful to reference forward()
        self.damping = wc["damping"]    # unused, faithful to reference forward()
        self.hidden_size = wc["hidden_size"]

        H, MEM, V = self.hidden_size, self.memory_size, self.vocab_size
        ks = jax.random.split(key, 16)

        def w(k, shape, scale=0.1):
            return jax.random.normal(k, shape, jnp.float32) * scale

        # TODO(synk): bf16 weight storage would halve weight DMA; weights are now
        # DMA'd once per rollout, so f32 is kept at these toy sizes.
        self.phys_params = dict(
            w1=w(ks[0], (ENTITY_DIM, H)), b1=jnp.zeros((1, H), jnp.float32),
            w2=w(ks[1], (H, H)),          b2=jnp.zeros((1, H), jnp.float32))
        # Fused utterance cell: [wf | wm], [bf | bm] -> one matmul in-kernel.
        self.utt_params = dict(
            w=jnp.concatenate([w(ks[2], (V + MEM, H)), w(ks[3], (V + MEM, MEM))], axis=1),
            b=jnp.zeros((1, H + MEM), jnp.float32))
        act_in = 4 + MEM + 2 * H
        # Packed heads: [velocity(2) | gaze(2) | utterance(V) | memory(MEM)]
        wh = jnp.concatenate(
            [w(ks[5], (H, 2)), w(ks[6], (H, 2)), w(ks[7], (H, V)), w(ks[8], (H, MEM))],
            axis=1)
        self.act_params = dict(
            w1=w(ks[4], (act_in, H)), b1=jnp.zeros((1, H), jnp.float32),
            wh=wh, bh=jnp.zeros((1, 4 + V + MEM), jnp.float32))
        self._state_key = ks[9]
        self._noise_key = ks[10]
        self.sigma = 0.1
        self._forward_jit = None

    # ---------------- reset ---------------- #
    def reset(self):
        B, A, L = self.batch_size, self.num_agents, self.num_landmarks
        k = jax.random.split(self._state_key, 8)

        pos = jax.random.uniform(k[0], (B, A, 2)) * self.width
        velocity = jnp.zeros((B, A, 2), jnp.float32)
        gaze = jax.random.uniform(k[1], (B, A, 2)) * self.width
        color = jax.random.randint(k[2], (B, A, 3), 0, 255).astype(jnp.float32)
        shape = jax.random.randint(k[3], (B, A, 1), 0, self.num_shapes).astype(jnp.float32)
        self.agents = jnp.concatenate((pos, velocity, gaze, color, shape), axis=2)
        self.initial_positions = pos
        self.initial_gazes = gaze
        # NOTE: faithful to the reference, which returns all-ones "rotation" matrices.
        self.rotation_matrices = jnp.ones((B, A, 2, 2), jnp.float32)

        lpos = jax.random.uniform(k[4], (B, L, 2)) * self.width
        lcolor = jax.random.randint(k[5], (B, L, 3), 0, 255).astype(jnp.float32)
        lshape = jax.random.randint(k[6], (B, L, 1), 0, self.num_shapes).astype(jnp.float32)
        lvel = jnp.zeros((B, L, 2), jnp.float32)
        lgaze = jnp.tile(jnp.array([-1.0, -1.0], jnp.float32), (B, L, 1))
        self.landmarks = jnp.concatenate((lpos, lvel, lgaze, lcolor, lshape), axis=2)

        goals = jnp.zeros((B, A, 4), jnp.float32)
        goals = goals.at[:, 0, 0].set(1.0)
        goals = goals.at[:, 0, 1].set(0.0)
        goals = goals.at[:, 0, 2].set(self.landmarks[:, 0, 0])
        goals = goals.at[:, 0, 3].set(self.landmarks[:, 0, 1])
        self.goals = goals

        self.utterance = jnp.zeros((B, A, self.vocab_size), jnp.float32)
        self.utterance_memory = jnp.zeros((B, A, A, self.memory_size), jnp.float32)
        self.final_memory = jnp.zeros((B, A, self.memory_size), jnp.float32)

    # ---------------- jitted full-rollout forward ---------------- #
    def _make_forward_fn(self):
        B, A, L = self.batch_size, self.num_agents, self.num_landmarks
        E = A + L
        H, MEM, V = self.hidden_size, self.memory_size, self.vocab_size
        T = self.timesteps
        G, GE, GA, BE = A * B, A * B * E, A * B * A, B * E
        sigma = self.sigma

        # ----- structural 0/1 matrices: index plumbing expressed as matmuls -----
        rrep = np.zeros((GE, BE), np.float32)   # obs row <- source entity row
        qsel = np.zeros((GE, BE), np.float32)   # obs row <- observing agent's entity row
        se = np.zeros((G, GE), np.float32)      # block-diag: pool over entities per group
        sa = np.zeros((G, GA), np.float32)      # block-diag: pool over speakers per group
        ru = np.zeros((GA, G), np.float32)      # (listener g, speaker s) <- speaker utterance row
        pga = np.zeros((BE, G), np.float32)     # scatter agent-major updates into entity rows
        selag = np.zeros((G, BE), np.float32)   # gather agent rows in agent-major order
        for a in range(A):
            for b in range(B):
                g = a * B + b
                selag[g, b * E + a] = 1.0
                pga[b * E + a, g] = 1.0
                for k in range(E):
                    rrep[g * E + k, b * E + k] = 1.0
                    qsel[g * E + k, b * E + a] = 1.0
                    se[g, g * E + k] = 1.0
                for s in range(A):
                    ru[g * A + s, s * B + b] = 1.0
                    sa[g, g * A + s] = 1.0
        dmat = rrep - qsel
        rrep_j, dmat_j, se_j, sa_j, ru_j, pga_j, selag_j = (
            jnp.asarray(m) for m in (rrep, dmat, se, sa, ru, pga, selag))

        kern = functools.partial(
            _rollout_kernel, hidden=H, vocab=V, sigma=sigma,
            log_sigma=float(np.log(sigma)), log_2pi=float(np.log(2.0 * np.pi)))

        def rollout(params, ent0, utt0, umem0, fmem0, goals_am, rotc, noise):
            inputs = [
                params["phys"]["w1"], params["phys"]["b1"],
                params["phys"]["w2"], params["phys"]["b2"],
                params["utt"]["w"], params["utt"]["b"],
                params["act"]["w1"], params["act"]["b1"],
                params["act"]["wh"], params["act"]["bh"],
                rrep_j, dmat_j, rotc, se_j, sa_j, ru_j, pga_j, selag_j, goals_am,
                ent0, utt0, umem0, fmem0,
            ]
            in_specs = [_const_spec(x.shape) for x in inputs]
            # per-timestep noise block (squeezed leading t)
            in_specs.append(pl.BlockSpec((None, G, 4), lambda t: (t, 0, 0)))
            inputs.append(noise)
            out_specs = (
                _const_spec((BE, ENTITY_DIM)),           # carried entity table
                _const_spec((G, V)),                     # carried utterances
                _const_spec((GA, MEM)),                  # carried utterance memories
                _const_spec((G, MEM)),                   # carried final memories
                pl.BlockSpec((None, G, STATS_W), lambda t: (t, 0, 0)),  # per-step stats
            )
            out_shape = (
                jax.ShapeDtypeStruct((BE, ENTITY_DIM), jnp.float32),
                jax.ShapeDtypeStruct((G, V), jnp.float32),
                jax.ShapeDtypeStruct((GA, MEM), jnp.float32),
                jax.ShapeDtypeStruct((G, MEM), jnp.float32),
                jax.ShapeDtypeStruct((T, G, STATS_W), jnp.float32),
            )
            return pl.pallas_call(
                kern, grid=(T,), in_specs=in_specs, out_specs=out_specs,
                out_shape=out_shape,
                compiler_params=pltpu.CompilerParams(
                    dimension_semantics=("arbitrary",)),
            )(*inputs)

        def fwd(params, state, noise):
            agents = state["agents"]
            landmarks = state["landmarks"]
            goals = state["goals"]
            rot = state["rot"]

            # layout transforms once per rollout (agent-major / batch-major entity table)
            ent0 = jnp.concatenate([agents, landmarks], axis=1).reshape(BE, ENTITY_DIM)
            utt0 = jnp.transpose(state["utterance"], (1, 0, 2)).reshape(G, V)
            umem0 = jnp.transpose(state["utterance_memory"], (1, 0, 2, 3)).reshape(GA, MEM)
            fmem0 = jnp.transpose(state["final_memory"], (1, 0, 2)).reshape(G, MEM)
            goals_am = jnp.transpose(goals, (1, 0, 2)).reshape(G, 4)
            rotc = jnp.repeat(
                jnp.transpose(rot, (1, 0, 2, 3)).reshape(G, 4), E, axis=0)  # (GE, 4)

            ent_f, utt_f, umem_f, fmem_f, stats = rollout(
                params, ent0, utt0, umem0, fmem0, goals_am, rotc, noise)

            # per-agent reward = -norm over (batch, 2); log-prob summed over batch
            sq = stats[:, :, 0].reshape(T, A, B)
            lp = stats[:, :, 1].reshape(T, A, B)
            rewards = (-jnp.sqrt(jnp.sum(sq, axis=-1))).reshape(T * A)
            log_probs = jnp.sum(lp, axis=-1).reshape(T * A)

            # discounted returns over the flat (timestep-major, agent-minor) list,
            # exactly as the reference compute_loss; lower-triangular gamma matmul
            gamma = 0.99
            n = T * A
            ii = jnp.arange(n, dtype=jnp.float32)[:, None]
            jj = jnp.arange(n, dtype=jnp.float32)[None, :]
            gmat = jnp.where(jj >= ii, gamma ** (jj - ii), 0.0)
            returns = gmat @ rewards
            returns = (returns - returns.mean()) / (jnp.std(returns, ddof=1) + 1e-9)
            loss = jnp.sum(-log_probs * returns)

            new_state = dict(
                agents=ent_f.reshape(B, E, ENTITY_DIM)[:, :A],
                landmarks=landmarks, goals=goals, rot=rot,
                utterance=jnp.transpose(utt_f.reshape(A, B, V), (1, 0, 2)),
                utterance_memory=jnp.transpose(
                    umem_f.reshape(A, B, A, MEM), (1, 0, 2, 3)),
                final_memory=jnp.transpose(fmem_f.reshape(A, B, MEM), (1, 0, 2)))
            return loss, new_state

        return fwd

    def forward(self):
        if self._forward_jit is None:
            self._forward_jit = jax.jit(self._make_forward_fn())
        params = dict(phys=self.phys_params, utt=self.utt_params, act=self.act_params)
        state = dict(agents=self.agents, landmarks=self.landmarks, goals=self.goals,
                     rot=self.rotation_matrices, utterance=self.utterance,
                     utterance_memory=self.utterance_memory,
                     final_memory=self.final_memory)
        self._noise_key, use_key = jax.random.split(self._noise_key)
        # TODO(synk): noise could be generated in-kernel (pltpu.prng_seed +
        # stateful_normal); drawn once per rollout here (single fused RNG op,
        # no per-timestep dispatch either way).
        noise = jax.random.normal(
            use_key, (self.timesteps, self.num_agents * self.batch_size, 4), jnp.float32)
        loss, new_state = self._forward_jit(params, state, noise)
        # persist mutated world state (faithful to the reference's in-place updates)
        self.agents = new_state["agents"]
        self.utterance = new_state["utterance"]
        self.utterance_memory = new_state["utterance_memory"]
        self.final_memory = new_state["final_memory"]
        return loss


# --------------------------------------------------------------------------- #
if __name__ == "__main__":
    config = {
        "world": dict(height=16, width=16, num_agents=2, num_landmarks=2,
                      num_shapes=3, batch_size=2, memory_size=16, timesteps=2,
                      vocab_size=8, delta_t=0.1, damping=0.5, hidden_size=32)
    }
    key = jax.random.PRNGKey(0)
    world = World(config, key)
    world.reset()
    loss = world.forward()
    jax.block_until_ready(loss)
    assert jnp.isfinite(loss), "loss is not finite"
    print("KERNEL_OK")
</pallas_src>

<mosaic_0001>
module attributes {stable_mosaic.version = 11 : i64} {
  func.func @_rollout_kernel(%arg0: i32, %arg1: memref<10x32xf32, #tpu.memory_space<vmem>>, %arg2: memref<1x32xf32, #tpu.memory_space<vmem>>, %arg3: memref<32x32xf32, #tpu.memory_space<vmem>>, %arg4: memref<1x32xf32, #tpu.memory_space<vmem>>, %arg5: memref<24x48xf32, #tpu.memory_space<vmem>>, %arg6: memref<1x48xf32, #tpu.memory_space<vmem>>, %arg7: memref<84x32xf32, #tpu.memory_space<vmem>>, %arg8: memref<1x32xf32, #tpu.memory_space<vmem>>, %arg9: memref<32x28xf32, #tpu.memory_space<vmem>>, %arg10: memref<1x28xf32, #tpu.memory_space<vmem>>, %arg11: memref<16x8xf32, #tpu.memory_space<vmem>>, %arg12: memref<16x8xf32, #tpu.memory_space<vmem>>, %arg13: memref<16x4xf32, #tpu.memory_space<vmem>>, %arg14: memref<4x16xf32, #tpu.memory_space<vmem>>, %arg15: memref<4x8xf32, #tpu.memory_space<vmem>>, %arg16: memref<8x4xf32, #tpu.memory_space<vmem>>, %arg17: memref<8x4xf32, #tpu.memory_space<vmem>>, %arg18: memref<4x8xf32, #tpu.memory_space<vmem>>, %arg19: memref<4x4xf32, #tpu.memory_space<vmem>>, %arg20: memref<8x10xf32, #tpu.memory_space<vmem>>, %arg21: memref<4x8xf32, #tpu.memory_space<vmem>>, %arg22: memref<8x16xf32, #tpu.memory_space<vmem>>, %arg23: memref<4x16xf32, #tpu.memory_space<vmem>>, %arg24: memref<1x4x4xf32, #tpu.memory_space<vmem>>, %arg25: memref<8x10xf32, #tpu.memory_space<vmem>>, %arg26: memref<4x8xf32, #tpu.memory_space<vmem>>, %arg27: memref<8x16xf32, #tpu.memory_space<vmem>>, %arg28: memref<4x16xf32, #tpu.memory_space<vmem>>, %arg29: memref<1x4x128xf32, #tpu.memory_space<vmem>>) attributes {dimension_semantics = [#tpu.dimension_semantics<arbitrary>], iteration_bounds = array<i64: 2>, scalar_prefetch = 0 : i64, scratch_operands = 0 : i64, tpu.core_type = #tpu.core_type<tc>, window_params = [{pipeline_mode = #tpu.pipeline_mode<synchronous>, transform_indices = @transform_0, window_bounds = array<i64: 10, 32>}, {pipeline_mode = #tpu.pipeline_mode<synchronous>, transform_indices = @transform_1, window_bounds = array<i64: 1, 32>}, {pipeline_mode = #tpu.pipeline_mode<synchronous>, transform_indices = @transform_2, window_bounds = array<i64: 32, 32>}, {pipeline_mode = #tpu.pipeline_mode<synchronous>, transform_indices = @transform_3, window_bounds = array<i64: 1, 32>}, {pipeline_mode = #tpu.pipeline_mode<synchronous>, transform_indices = @transform_4, window_bounds = array<i64: 24, 48>}, {pipeline_mode = #tpu.pipeline_mode<synchronous>, transform_indices = @transform_5, window_bounds = array<i64: 1, 48>}, {pipeline_mode = #tpu.pipeline_mode<synchronous>, transform_indices = @transform_6, window_bounds = array<i64: 84, 32>}, {pipeline_mode = #tpu.pipeline_mode<synchronous>, transform_indices = @transform_7, window_bounds = array<i64: 1, 32>}, {pipeline_mode = #tpu.pipeline_mode<synchronous>, transform_indices = @transform_8, window_bounds = array<i64: 32, 28>}, {pipeline_mode = #tpu.pipeline_mode<synchronous>, transform_indices = @transform_9, window_bounds = array<i64: 1, 28>}, {pipeline_mode = #tpu.pipeline_mode<synchronous>, transform_indices = @transform_10, window_bounds = array<i64: 16, 8>}, {pipeline_mode = #tpu.pipeline_mode<synchronous>, transform_indices = @transform_11, window_bounds = array<i64: 16, 8>}, {pipeline_mode = #tpu.pipeline_mode<synchronous>, transform_indices = @transform_12, window_bounds = array<i64: 16, 4>}, {pipeline_mode = #tpu.pipeline_mode<synchronous>, transform_indices = @transform_13, window_bounds = array<i64: 4, 16>}, {pipeline_mode = #tpu.pipeline_mode<synchronous>, transform_indices = @transform_14, window_bounds = array<i64: 4, 8>}, {pipeline_mode = #tpu.pipeline_mode<synchronous>, transform_indices = @transform_15, window_bounds = array<i64: 8, 4>}, {pipeline_mode = #tpu.pipeline_mode<synchronous>, transform_indices = @transform_16, window_bounds = array<i64: 8, 4>}, {pipeline_mode = #tpu.pipeline_mode<synchronous>, transform_indices = @transform_17, window_bounds = array<i64: 4, 8>}, {pipeline_mode = #tpu.pipeline_mode<synchronous>, transform_indices = @transform_18, window_bounds = array<i64: 4, 4>}, {pipeline_mode = #tpu.pipeline_mode<synchronous>, transform_indices = @transform_19, window_bounds = array<i64: 8, 10>}, {pipeline_mode = #tpu.pipeline_mode<synchronous>, transform_indices = @transform_20, window_bounds = array<i64: 4, 8>}, {pipeline_mode = #tpu.pipeline_mode<synchronous>, transform_indices = @transform_21, window_bounds = array<i64: 8, 16>}, {pipeline_mode = #tpu.pipeline_mode<synchronous>, transform_indices = @transform_22, window_bounds = array<i64: 4, 16>}, {transform_indices = @transform_23, window_bounds = array<i64: 1, 4, 4>}, {pipeline_mode = #tpu.pipeline_mode<synchronous>, transform_indices = @transform_24, window_bounds = array<i64: 8, 10>}, {pipeline_mode = #tpu.pipeline_mode<synchronous>, transform_indices = @transform_25, window_bounds = array<i64: 4, 8>}, {pipeline_mode = #tpu.pipeline_mode<synchronous>, transform_indices = @transform_26, window_bounds = array<i64: 8, 16>}, {pipeline_mode = #tpu.pipeline_mode<synchronous>, transform_indices = @transform_27, window_bounds = array<i64: 4, 16>}, {transform_indices = @transform_28, window_bounds = array<i64: 1, 4, 128>}]} {
    %c0_i32 = arith.constant 0 : i32
    %0 = arith.cmpi eq, %arg0, %c0_i32 : i32
    %1 = arith.extui %0 : i1 to i32
    %c0_i32_0 = arith.constant 0 : i32
    %2 = arith.cmpi ne, %1, %c0_i32_0 : i32
    scf.if %2 {
      %c0_94 = arith.constant 0 : index
      %c0_95 = arith.constant 0 : index
      %175 = vector.load %arg20[%c0_94, %c0_95] : memref<8x10xf32, #tpu.memory_space<vmem>>, vector<8x10xf32>
      %c0_96 = arith.constant 0 : index
      %c0_97 = arith.constant 0 : index
      %176 = vector.load %arg25[%c0_96, %c0_97] : memref<8x10xf32, #tpu.memory_space<vmem>>, vector<8x10xf32>
      tpu.vector_store %arg25[%c0_96, %c0_97], %175 {strides = array<i32>} : memref<8x10xf32, #tpu.memory_space<vmem>>, vector<8x10xf32>,
      %c0_98 = arith.constant 0 : index
      %c0_99 = arith.constant 0 : index
      %177 = vector.load %arg21[%c0_98, %c0_99] : memref<4x8xf32, #tpu.memory_space<vmem>>, vector<4x8xf32>
      %c0_100 = arith.constant 0 : index
      %c0_101 = arith.constant 0 : index
      %178 = vector.load %arg26[%c0_100, %c0_101] : memref<4x8xf32, #tpu.memory_space<vmem>>, vector<4x8xf32>
      tpu.vector_store %arg26[%c0_100, %c0_101], %177 {strides = array<i32>} : memref<4x8xf32, #tpu.memory_space<vmem>>, vector<4x8xf32>,
      %c0_102 = arith.constant 0 : index
      %c0_103 = arith.constant 0 : index
      %179 = vector.load %arg22[%c0_102, %c0_103] : memref<8x16xf32, #tpu.memory_space<vmem>>, vector<8x16xf32>
      %c0_104 = arith.constant 0 : index
      %c0_105 = arith.constant 0 : index
      %180 = vector.load %arg27[%c0_104, %c0_105] : memref<8x16xf32, #tpu.memory_space<vmem>>, vector<8x16xf32>
      tpu.vector_store %arg27[%c0_104, %c0_105], %179 {strides = array<i32>} : memref<8x16xf32, #tpu.memory_space<vmem>>, vector<8x16xf32>,
      %c0_106 = arith.constant 0 : index
      %c0_107 = arith.constant 0 : index
      %181 = vector.load %arg23[%c0_106, %c0_107] : memref<4x16xf32, #tpu.memory_space<vmem>>, vector<4x16xf32>
      %c0_108 = arith.constant 0 : index
      %c0_109 = arith.constant 0 : index
      %182 = vector.load %arg28[%c0_108, %c0_109] : memref<4x16xf32, #tpu.memory_space<vmem>>, vector<4x16xf32>
      tpu.vector_store %arg28[%c0_108, %c0_109], %181 {strides = array<i32>} : memref<4x16xf32, #tpu.memory_space<vmem>>, vector<4x16xf32>,
    } else {
    }
    %c0 = arith.constant 0 : index
    %c0_1 = arith.constant 0 : index
    %3 = vector.load %arg25[%c0, %c0_1] : memref<8x10xf32, #tpu.memory_space<vmem>>, vector<8x10xf32>
    %c0_2 = arith.constant 0 : index
    %c0_3 = arith.constant 0 : index
    %4 = vector.load %arg26[%c0_2, %c0_3] : memref<4x8xf32, #tpu.memory_space<vmem>>, vector<4x8xf32>
    %c0_4 = arith.constant 0 : index
    %c0_5 = arith.constant 0 : index
    %5 = vector.load %arg27[%c0_4, %c0_5] : memref<8x16xf32, #tpu.memory_space<vmem>>, vector<8x16xf32>
    %c0_6 = arith.constant 0 : index
    %c0_7 = arith.constant 0 : index
    %6 = vector.load %arg28[%c0_6, %c0_7] : memref<4x16xf32, #tpu.memory_space<vmem>>, vector<4x16xf32>
    %c0_8 = arith.constant 0 : index
    %c0_9 = arith.constant 0 : index
    %7 = vector.load %arg19[%c0_8, %c0_9] : memref<4x4xf32, #tpu.memory_space<vmem>>, vector<4x4xf32>
    %c0_10 = arith.constant 0 : index
    %c0_11 = arith.constant 0 : index
    %8 = vector.load %arg11[%c0_10, %c0_11] : memref<16x8xf32, #tpu.memory_space<vmem>>, vector<16x8xf32>
    %cst = arith.constant dense<0.000000e+00> : vector<16x10xf32>
    %9 = tpu.matmul %8, %3, %cst {dimension_numbers = #tpu.dot_dimension_numbers<[1], [0], [0], [1], [0, 0, 1, 1], [], []>} : vector<16x8xf32>, vector<8x10xf32>, vector<16x10xf32> -> vector<16x10xf32>
    %c0_12 = arith.constant 0 : index
    %c0_13 = arith.constant 0 : index
    %10 = vector.load %arg12[%c0_12, %c0_13] : memref<16x8xf32, #tpu.memory_space<vmem>>, vector<16x8xf32>
    %cst_14 = arith.constant dense<0.000000e+00> : vector<16x10xf32>
    %11 = tpu.matmul %10, %3, %cst_14 {dimension_numbers = #tpu.dot_dimension_numbers<[1], [0], [0], [1], [0, 0, 1, 1], [], []>} : vector<16x8xf32>, vector<8x10xf32>, vector<16x10xf32> -> vector<16x10xf32>
    %c0_15 = arith.constant 0 : index
    %c0_16 = arith.constant 0 : index
    %12 = vector.load %arg13[%c0_15, %c0_16] : memref<16x4xf32, #tpu.memory_space<vmem>>, vector<16x4xf32>
    %13 = vector.extract_strided_slice %11 {offsets = [0, 0], sizes = [16, 1], strides = [1, 1]} : vector<16x10xf32> to vector<16x1xf32>
    %14 = vector.extract_strided_slice %12 {offsets = [0, 0], sizes = [16, 1], strides = [1, 1]} : vector<16x4xf32> to vector<16x1xf32>
    %15 = arith.mulf %13, %14 : vector<16x1xf32>
    %16 = vector.extract_strided_slice %11 {offsets = [0, 1], sizes = [16, 1], strides = [1, 1]} : vector<16x10xf32> to vector<16x1xf32>
    %17 = vector.extract_strided_slice %12 {offsets = [0, 1], sizes = [16, 1], strides = [1, 1]} : vector<16x4xf32> to vector<16x1xf32>
    %18 = arith.mulf %16, %17 : vector<16x1xf32>
    %19 = arith.addf %15, %18 : vector<16x1xf32>
    %20 = vector.extract_strided_slice %11 {offsets = [0, 0], sizes = [16, 1], strides = [1, 1]} : vector<16x10xf32> to vector<16x1xf32>
    %21 = vector.extract_strided_slice %12 {offsets = [0, 2], sizes = [16, 1], strides = [1, 1]} : vector<16x4xf32> to vector<16x1xf32>
    %22 = arith.mulf %20, %21 : vector<16x1xf32>
    %23 = vector.extract_strided_slice %11 {offsets = [0, 1], sizes = [16, 1], strides = [1, 1]} : vector<16x10xf32> to vector<16x1xf32>
    %24 = vector.extract_strided_slice %12 {offsets = [0, 3], sizes = [16, 1], strides = [1, 1]} : vector<16x4xf32> to vector<16x1xf32>
    %25 = arith.mulf %23, %24 : vector<16x1xf32>
    %26 = arith.addf %22, %25 : vector<16x1xf32>
    %c0_17 = arith.constant 0 : index
    %c0_18 = arith.constant 0 : index
    %27 = vector.load %arg1[%c0_17, %c0_18] : memref<10x32xf32, #tpu.memory_space<vmem>>, vector<10x32xf32>
    %28 = vector.extract_strided_slice %27 {offsets = [0, 0], sizes = [1, 32], strides = [1, 1]} : vector<10x32xf32> to vector<1x32xf32>
    %29 = vector.broadcast %19 : vector<16x1xf32> to vector<16x32xf32>
    %30 = vector.broadcast %28 : vector<1x32xf32> to vector<16x32xf32>
    %31 = arith.mulf %29, %30 : vector<16x32xf32>
    %32 = vector.extract_strided_slice %27 {offsets = [1, 0], sizes = [1, 32], strides = [1, 1]} : vector<10x32xf32> to vector<1x32xf32>
    %33 = vector.broadcast %26 : vector<16x1xf32> to vector<16x32xf32>
    %34 = vector.broadcast %32 : vector<1x32xf32> to vector<16x32xf32>
    %35 = arith.mulf %33, %34 : vector<16x32xf32>
    %36 = arith.addf %31, %35 : vector<16x32xf32>
    %37 = vector.extract_strided_slice %9 {offsets = [0, 2], sizes = [16, 8], strides = [1, 1]} : vector<16x10xf32> to vector<16x8xf32>
    %38 = vector.extract_strided_slice %27 {offsets = [2, 0], sizes = [8, 32], strides = [1, 1]} : vector<10x32xf32> to vector<8x32xf32>
    %cst_19 = arith.constant dense<0.000000e+00> : vector<16x32xf32>
    %39 = tpu.matmul %37, %38, %cst_19 {dimension_numbers = #tpu.dot_dimension_numbers<[1], [0], [0], [1], [0, 0, 1, 1], [], []>} : vector<16x8xf32>, vector<8x32xf32>, vector<16x32xf32> -> vector<16x32xf32>
    %40 = arith.addf %36, %39 : vector<16x32xf32>
    %c0_20 = arith.constant 0 : index
    %c0_21 = arith.constant 0 : index
    %41 = vector.load %arg2[%c0_20, %c0_21] : memref<1x32xf32, #tpu.memory_space<vmem>>, vector<1x32xf32>
    %42 = vector.broadcast %41 : vector<1x32xf32> to vector<16x32xf32>
    %43 = arith.addf %40, %42 : vector<16x32xf32>
    %cst_22 = arith.constant 0.000000e+00 : f32
    %44 = vector.broadcast %cst_22 : f32 to vector<16x32xf32>
    %45 = arith.maximumf %43, %44 : vector<16x32xf32>
    %c0_23 = arith.constant 0 : index
    %c0_24 = arith.constant 0 : index
    %46 = vector.load %arg3[%c0_23, %c0_24] : memref<32x32xf32, #tpu.memory_space<vmem>>, vector<32x32xf32>
    %cst_25 = arith.constant dense<0.000000e+00> : vector<16x32xf32>
    %47 = tpu.matmul %45, %46, %cst_25 {dimension_numbers = #tpu.dot_dimension_numbers<[1], [0], [0], [1], [0, 0, 1, 1], [], []>} : vector<16x32xf32>, vector<32x32xf32>, vector<16x32xf32> -> vector<16x32xf32>
    %c0_26 = arith.constant 0 : index
    %c0_27 = arith.constant 0 : index
    %48 = vector.load %arg4[%c0_26, %c0_27] : memref<1x32xf32, #tpu.memory_space<vmem>>, vector<1x32xf32>
    %49 = vector.broadcast %48 : vector<1x32xf32> to vector<16x32xf32>
    %50 = arith.addf %47, %49 : vector<16x32xf32>
    %cst_28 = arith.constant dense<0xFF800000> : vector<32xf32>
    %51 = vector.multi_reduction <maximumf>, %50, %cst_28 [0] : vector<16x32xf32> to vector<32xf32>
    %52 = vector.shape_cast %51 : vector<32xf32> to vector<1x32xf32>
    %53 = vector.broadcast %52 : vector<1x32xf32> to vector<16x32xf32>
    %54 = arith.subf %50, %53 : vector<16x32xf32>
    %cst_29 = arith.constant -8.000000e+01 : f32
    %55 = vector.broadcast %cst_29 : f32 to vector<16x32xf32>
    %56 = arith.maximumf %54, %55 : vector<16x32xf32>
    %57 = math.exp %56 : vector<16x32xf32>
    %c0_30 = arith.constant 0 : index
    %c0_31 = arith.constant 0 : index
    %58 = vector.load %arg14[%c0_30, %c0_31] : memref<4x16xf32, #tpu.memory_space<vmem>>, vector<4x16xf32>
    %59 = arith.mulf %57, %50 : vector<16x32xf32>
    %cst_32 = arith.constant dense<0.000000e+00> : vector<4x32xf32>
    %60 = tpu.matmul %58, %59, %cst_32 {dimension_numbers = #tpu.dot_dimension_numbers<[1], [0], [0], [1], [0, 0, 1, 1], [], []>} : vector<4x16xf32>, vector<16x32xf32>, vector<4x32xf32> -> vector<4x32xf32>
    %c0_33 = arith.constant 0 : index
    %c0_34 = arith.constant 0 : index
    %61 = vector.load %arg14[%c0_33, %c0_34] : memref<4x16xf32, #tpu.memory_space<vmem>>, vector<4x16xf32>
    %cst_35 = arith.constant dense<0.000000e+00> : vector<4x32xf32>
    %62 = tpu.matmul %61, %57, %cst_35 {dimension_numbers = #tpu.dot_dimension_numbers<[1], [0], [0], [1], [0, 0, 1, 1], [], []>} : vector<4x16xf32>, vector<16x32xf32>, vector<4x32xf32> -> vector<4x32xf32>
    %63 = tpu.reciprocal %62 {approx = true} : vector<4x32xf32> -> vector<4x32xf32>
    %64 = arith.mulf %60, %63 : vector<4x32xf32>
    %c0_36 = arith.constant 0 : index
    %c0_37 = arith.constant 0 : index
    %65 = vector.load %arg16[%c0_36, %c0_37] : memref<8x4xf32, #tpu.memory_space<vmem>>, vector<8x4xf32>
    %cst_38 = arith.constant dense<0.000000e+00> : vector<8x8xf32>
    %66 = tpu.matmul %65, %4, %cst_38 {dimension_numbers = #tpu.dot_dimension_numbers<[1], [0], [0], [1], [0, 0, 1, 1], [], []>} : vector<8x4xf32>, vector<4x8xf32>, vector<8x8xf32> -> vector<8x8xf32>
    %67 = tpu.concatenate %66, %5 in 1 : vector<8x8xf32>, vector<8x16xf32> -> vector<8x24xf32>
    %c0_39 = arith.constant 0 : index
    %c0_40 = arith.constant 0 : index
    %68 = vector.load %arg5[%c0_39, %c0_40] : memref<24x48xf32, #tpu.memory_space<vmem>>, vector<24x48xf32>
    %cst_41 = arith.constant dense<0.000000e+00> : vector<8x48xf32>
    %69 = tpu.matmul %67, %68, %cst_41 {dimension_numbers = #tpu.dot_dimension_numbers<[1], [0], [0], [1], [0, 0, 1, 1], [], []>} : vector<8x24xf32>, vector<24x48xf32>, vector<8x48xf32> -> vector<8x48xf32>
    %c0_42 = arith.constant 0 : index
    %c0_43 = arith.constant 0 : index
    %70 = vector.load %arg6[%c0_42, %c0_43] : memref<1x48xf32, #tpu.memory_space<vmem>>, vector<1x48xf32>
    %71 = vector.broadcast %70 : vector<1x48xf32> to vector<8x48xf32>
    %72 = arith.addf %69, %71 : vector<8x48xf32>
    %73 = math.tanh %72 : vector<8x48xf32>
    %74 = vector.extract_strided_slice %73 {offsets = [0, 0], sizes = [8, 32], strides = [1, 1]} : vector<8x48xf32> to vector<8x32xf32>
    %75 = vector.extract_strided_slice %73 {offsets = [0, 32], sizes = [8, 16], strides = [1, 1]} : vector<8x48xf32> to vector<8x16xf32>
    %cst_44 = arith.constant dense<0xFF800000> : vector<32xf32>
    %76 = vector.multi_reduction <maximumf>, %74, %cst_44 [0] : vector<8x32xf32> to vector<32xf32>
    %77 = vector.shape_cast %76 : vector<32xf32> to vector<1x32xf32>
    %78 = vector.broadcast %77 : vector<1x32xf32> to vector<8x32xf32>
    %79 = arith.subf %74, %78 : vector<8x32xf32>
    %80 = math.exp %79 : vector<8x32xf32>
    %c0_45 = arith.constant 0 : index
    %c0_46 = arith.constant 0 : index
    %81 = vector.load %arg15[%c0_45, %c0_46] : memref<4x8xf32, #tpu.memory_space<vmem>>, vector<4x8xf32>
    %82 = arith.mulf %80, %74 : vector<8x32xf32>
    %cst_47 = arith.constant dense<0.000000e+00> : vector<4x32xf32>
    %83 = tpu.matmul %81, %82, %cst_47 {dimension_numbers = #tpu.dot_dimension_numbers<[1], [0], [0], [1], [0, 0, 1, 1], [], []>} : vector<4x8xf32>, vector<8x32xf32>, vector<4x32xf32> -> vector<4x32xf32>
    %c0_48 = arith.constant 0 : index
    %c0_49 = arith.constant 0 : index
    %84 = vector.load %arg15[%c0_48, %c0_49] : memref<4x8xf32, #tpu.memory_space<vmem>>, vector<4x8xf32>
    %cst_50 = arith.constant dense<0.000000e+00> : vector<4x32xf32>
    %85 = tpu.matmul %84, %80, %cst_50 {dimension_numbers = #tpu.dot_dimension_numbers<[1], [0], [0], [1], [0, 0, 1, 1], [], []>} : vector<4x8xf32>, vector<8x32xf32>, vector<4x32xf32> -> vector<4x32xf32>
    %86 = tpu.reciprocal %85 {approx = true} : vector<4x32xf32> -> vector<4x32xf32>
    %87 = arith.mulf %83, %86 : vector<4x32xf32>
    %88 = tpu.concatenate %7, %6, %64, %87 in 1 : vector<4x4xf32>, vector<4x16xf32>, vector<4x32xf32>, vector<4x32xf32> -> vector<4x84xf32>
    %c0_51 = arith.constant 0 : index
    %c0_52 = arith.constant 0 : index
    %89 = vector.load %arg7[%c0_51, %c0_52] : memref<84x32xf32, #tpu.memory_space<vmem>>, vector<84x32xf32>
    %cst_53 = arith.constant dense<0.000000e+00> : vector<4x32xf32>
    %90 = tpu.matmul %88, %89, %cst_53 {dimension_numbers = #tpu.dot_dimension_numbers<[1], [0], [0], [1], [0, 0, 1, 1], [], []>} : vector<4x84xf32>, vector<84x32xf32>, vector<4x32xf32> -> vector<4x32xf32>
    %c0_54 = arith.constant 0 : index
    %c0_55 = arith.constant 0 : index
    %91 = vector.load %arg8[%c0_54, %c0_55] : memref<1x32xf32, #tpu.memory_space<vmem>>, vector<1x32xf32>
    %92 = vector.broadcast %91 : vector<1x32xf32> to vector<4x32xf32>
    %93 = arith.addf %90, %92 : vector<4x32xf32>
    %cst_56 = arith.constant 0.000000e+00 : f32
    %94 = vector.broadcast %cst_56 : f32 to vector<4x32xf32>
    %95 = arith.maximumf %93, %94 : vector<4x32xf32>
    %c0_57 = arith.constant 0 : index
    %c0_58 = arith.constant 0 : index
    %96 = vector.load %arg9[%c0_57, %c0_58] : memref<32x28xf32, #tpu.memory_space<vmem>>, vector<32x28xf32>
    %cst_59 = arith.constant dense<0.000000e+00> : vector<4x28xf32>
    %97 = tpu.matmul %95, %96, %cst_59 {dimension_numbers = #tpu.dot_dimension_numbers<[1], [0], [0], [1], [0, 0, 1, 1], [], []>} : vector<4x32xf32>, vector<32x28xf32>, vector<4x28xf32> -> vector<4x28xf32>
    %c0_60 = arith.constant 0 : index
    %c0_61 = arith.constant 0 : index
    %98 = vector.load %arg10[%c0_60, %c0_61] : memref<1x28xf32, #tpu.memory_space<vmem>>, vector<1x28xf32>
    %99 = vector.broadcast %98 : vector<1x28xf32> to vector<4x28xf32>
    %100 = arith.addf %97, %99 : vector<4x28xf32>
    %101 = tpu.iota {dimensions = array<i32: 1>} : vector<4x28xi32>
    %c4_i32 = arith.constant 4 : i32
    %102 = vector.broadcast %c4_i32 : i32 to vector<4x28xi32>
    %103 = arith.cmpi sge, %101, %102 : vector<4x28xi32>
    %c12_i32 = arith.constant 12 : i32
    %104 = vector.broadcast %c12_i32 : i32 to vector<4x28xi32>
    %105 = arith.cmpi slt, %101, %104 : vector<4x28xi32>
    %106 = arith.andi %103, %105 : vector<4x28xi1>
    %cst_62 = arith.constant -1.000000e+30 : f32
    %107 = vector.broadcast %cst_62 : f32 to vector<4x28xf32>
    %108 = arith.select %106, %100, %107 : vector<4x28xi1>, vector<4x28xf32>
    %cst_63 = arith.constant dense<0xFF800000> : vector<4xf32>
    %109 = vector.multi_reduction <maximumf>, %108, %cst_63 [1] : vector<4x28xf32> to vector<4xf32>
    %110 = vector.shape_cast %109 : vector<4xf32> to vector<4x1xf32>
    %111 = vector.broadcast %110 : vector<4x1xf32> to vector<4x28xf32>
    %112 = arith.subf %108, %111 : vector<4x28xf32>
    %113 = math.exp %112 : vector<4x28xf32>
    %cst_64 = arith.constant dense<0.000000e+00> : vector<4xf32>
    %114 = vector.multi_reduction <add>, %113, %cst_64 [1] : vector<4x28xf32> to vector<4xf32>
    %115 = vector.shape_cast %114 : vector<4xf32> to vector<4x1xf32>
    %116 = tpu.reciprocal %115 {approx = true} : vector<4x1xf32> -> vector<4x1xf32>
    %117 = vector.broadcast %116 : vector<4x1xf32> to vector<4x28xf32>
    %118 = arith.mulf %113, %117 : vector<4x28xf32>
    %119 = math.tanh %100 : vector<4x28xf32>
    %120 = arith.select %106, %118, %119 : vector<4x28xi1>, vector<4x28xf32>
    %121 = vector.extract_strided_slice %120 {offsets = [0, 4], sizes = [4, 8], strides = [1, 1]} : vector<4x28xf32> to vector<4x8xf32>
    %122 = vector.extract_strided_slice %120 {offsets = [0, 12], sizes = [4, 16], strides = [1, 1]} : vector<4x28xf32> to vector<4x16xf32>
    %c0_65 = arith.constant 0 : index
    %c0_66 = arith.constant 0 : index
    %c0_67 = arith.constant 0 : index
    %123 = vector.load %arg24[%c0_65, %c0_66, %c0_67] : memref<1x4x4xf32, #tpu.memory_space<vmem>>, vector<1x4x4xf32>
    %124 = vector.shape_cast %123 : vector<1x4x4xf32> to vector<4x4xf32>
    %125 = vector.extract_strided_slice %124 {offsets = [0, 0], sizes = [4, 2], strides = [1, 1]} : vector<4x4xf32> to vector<4x2xf32>
    %126 = vector.extract_strided_slice %120 {offsets = [0, 0], sizes = [4, 4], strides = [1, 1]} : vector<4x28xf32> to vector<4x4xf32>
    %cst_68 = arith.constant 1.000000e-01 : f32
    %127 = vector.broadcast %cst_68 : f32 to vector<4x4xf32>
    %128 = arith.mulf %127, %124 : vector<4x4xf32>
    %129 = arith.addf %126, %128 : vector<4x4xf32>
    %c0_69 = arith.constant 0 : index
    %c0_70 = arith.constant 0 : index
    %130 = vector.load %arg17[%c0_69, %c0_70] : memref<8x4xf32, #tpu.memory_space<vmem>>, vector<8x4xf32>
    %cst_71 = arith.constant dense<0.000000e+00> : vector<8x4xf32>
    %131 = tpu.matmul %130, %129, %cst_71 {dimension_numbers = #tpu.dot_dimension_numbers<[1], [0], [0], [1], [0, 0, 1, 1], [], []>} : vector<8x4xf32>, vector<4x4xf32>, vector<8x4xf32> -> vector<8x4xf32>
    %132 = vector.extract_strided_slice %131 {offsets = [0, 0], sizes = [8, 2], strides = [1, 1]} : vector<8x4xf32> to vector<8x2xf32>
    %133 = vector.extract_strided_slice %131 {offsets = [0, 2], sizes = [8, 2], strides = [1, 1]} : vector<8x4xf32> to vector<8x2xf32>
    %134 = vector.extract_strided_slice %3 {offsets = [0, 2], sizes = [8, 2], strides = [1, 1]} : vector<8x10xf32> to vector<8x2xf32>
    %135 = arith.subf %132, %134 : vector<8x2xf32>
    %cst_72 = arith.constant 0.000000e+00 : f32
    %136 = vector.broadcast %cst_72 : f32 to vector<8x4xf32>
    %137 = tpu.concatenate %132, %135, %133, %136 in 1 : vector<8x2xf32>, vector<8x2xf32>, vector<8x2xf32>, vector<8x4xf32> -> vector<8x10xf32>
    %138 = arith.addf %3, %137 : vector<8x10xf32>
    %c0_73 = arith.constant 0 : index
    %c0_74 = arith.constant 0 : index
    %139 = vector.load %arg25[%c0_73, %c0_74] : memref<8x10xf32, #tpu.memory_space<vmem>>, vector<8x10xf32>
    tpu.vector_store %arg25[%c0_73, %c0_74], %138 {strides = array<i32>} : memref<8x10xf32, #tpu.memory_space<vmem>>, vector<8x10xf32>,
    %c0_75 = arith.constant 0 : index
    %c0_76 = arith.constant 0 : index
    %140 = vector.load %arg26[%c0_75, %c0_76] : memref<4x8xf32, #tpu.memory_space<vmem>>, vector<4x8xf32>
    tpu.vector_store %arg26[%c0_75, %c0_76], %121 {strides = array<i32>} : memref<4x8xf32, #tpu.memory_space<vmem>>, vector<4x8xf32>,
    %c0_77 = arith.constant 0 : index
    %c0_78 = arith.constant 0 : index
    %141 = vector.load %arg27[%c0_77, %c0_78] : memref<8x16xf32, #tpu.memory_space<vmem>>, vector<8x16xf32>
    tpu.vector_store %arg27[%c0_77, %c0_78], %75 {strides = array<i32>} : memref<8x16xf32, #tpu.memory_space<vmem>>, vector<8x16xf32>,
    %c0_79 = arith.constant 0 : index
    %c0_80 = arith.constant 0 : index
    %142 = vector.load %arg28[%c0_79, %c0_80] : memref<4x16xf32, #tpu.memory_space<vmem>>, vector<4x16xf32>
    tpu.vector_store %arg28[%c0_79, %c0_80], %122 {strides = array<i32>} : memref<4x16xf32, #tpu.memory_space<vmem>>, vector<4x16xf32>,
    %c0_81 = arith.constant 0 : index
    %c0_82 = arith.constant 0 : index
    %143 = vector.load %arg18[%c0_81, %c0_82] : memref<4x8xf32, #tpu.memory_space<vmem>>, vector<4x8xf32>
    %cst_83 = arith.constant dense<0.000000e+00> : vector<4x10xf32>
    %144 = tpu.matmul %143, %138, %cst_83 {dimension_numbers = #tpu.dot_dimension_numbers<[1], [0], [0], [1], [0, 0, 1, 1], [], []>} : vector<4x8xf32>, vector<8x10xf32>, vector<4x10xf32> -> vector<4x10xf32>
    %145 = vector.extract_strided_slice %144 {offsets = [0, 0], sizes = [4, 2], strides = [1, 1]} : vector<4x10xf32> to vector<4x2xf32>
    %146 = vector.extract_strided_slice %7 {offsets = [0, 2], sizes = [4, 2], strides = [1, 1]} : vector<4x4xf32> to vector<4x2xf32>
    %147 = arith.subf %145, %146 : vector<4x2xf32>
    %148 = arith.mulf %147, %147 : vector<4x2xf32>
    %cst_84 = arith.constant dense<0.000000e+00> : vector<4xf32>
    %149 = vector.multi_reduction <add>, %148, %cst_84 [1] : vector<4x2xf32> to vector<4xf32>
    %150 = vector.shape_cast %149 : vector<4xf32> to vector<4x1xf32>
    %151 = arith.mulf %125, %125 : vector<4x2xf32>
    %cst_85 = arith.constant -5.000000e-01 : f32
    %152 = vector.broadcast %cst_85 : f32 to vector<4x2xf32>
    %153 = arith.mulf %152, %151 : vector<4x2xf32>
    %cst_86 = arith.constant -2.30258512 : f32
    %154 = vector.broadcast %cst_86 : f32 to vector<4x2xf32>
    %155 = arith.subf %153, %154 : vector<4x2xf32>
    %cst_87 = arith.constant 0.918938517 : f32
    %156 = vector.broadcast %cst_87 : f32 to vector<4x2xf32>
    %157 = arith.subf %155, %156 : vector<4x2xf32>
    %cst_88 = arith.constant dense<0.000000e+00> : vector<4xf32>
    %158 = vector.multi_reduction <add>, %157, %cst_88 [1] : vector<4x2xf32> to vector<4xf32>
    %159 = vector.shape_cast %158 : vector<4xf32> to vector<4x1xf32>
    %160 = tpu.iota {dimensions = array<i32: 1>} : vector<4x128xi32>
    %c0_i32_89 = arith.constant 0 : i32
    %161 = vector.broadcast %c0_i32_89 : i32 to vector<4x128xi32>
    %162 = arith.cmpi eq, %160, %161 : vector<4x128xi32>
    %c1_i32 = arith.constant 1 : i32
    %163 = vector.broadcast %c1_i32 : i32 to vector<4x128xi32>
    %164 = arith.cmpi eq, %160, %163 : vector<4x128xi32>
    %cst_90 = arith.constant 0.000000e+00 : f32
    %165 = vector.shape_cast %159 : vector<4x1xf32> to vector<4x1xf32>
    %166 = vector.broadcast %165 : vector<4x1xf32> to vector<4x128xf32>
    %167 = vector.broadcast %cst_90 : f32 to vector<4x128xf32>
    %168 = arith.select %164, %166, %167 : vector<4x128xi1>, vector<4x128xf32>
    %169 = vector.shape_cast %150 : vector<4x1xf32> to vector<4x1xf32>
    %170 = vector.broadcast %169 : vector<4x1xf32> to vector<4x128xf32>
    %171 = arith.select %162, %170, %168 : vector<4x128xi1>, vector<4x128xf32>
    %c0_91 = arith.constant 0 : index
    %c0_92 = arith.constant 0 : index
    %c0_93 = arith.constant 0 : index
    %172 = vector.load %arg29[%c0_91, %c0_92, %c0_93] : memref<1x4x128xf32, #tpu.memory_space<vmem>>, vector<1x4x128xf32>
    %173 = vector.shape_cast %172 : vector<1x4x128xf32> to vector<4x128xf32>
    %174 = vector.shape_cast %171 : vector<4x128xf32> to vector<1x4x128xf32>
    tpu.vector_store %arg29[%c0_91, %c0_92, %c0_93], %174 {strides = array<i32>} : memref<1x4x128xf32, #tpu.memory_space<vmem>>, vector<1x4x128xf32>,
    return
  }
  func.func @transform_0(%arg0: i32) -> (i32, i32) {
    %c0_i32 = arith.constant 0 : i32
    %c0_i32_0 = arith.constant 0 : i32
    %c0_i32_1 = arith.constant 0 : i32
    return %c0_i32, %c0_i32_0 : i32, i32
  }
  func.func @transform_1(%arg0: i32) -> (i32, i32) {
    %c0_i32 = arith.constant 0 : i32
    %c0_i32_0 = arith.constant 0 : i32
    %c0_i32_1 = arith.constant 0 : i32
    return %c0_i32, %c0_i32_0 : i32, i32
  }
  func.func @transform_2(%arg0: i32) -> (i32, i32) {
    %c0_i32 = arith.constant 0 : i32
    %c0_i32_0 = arith.constant 0 : i32
    %c0_i32_1 = arith.constant 0 : i32
    return %c0_i32, %c0_i32_0 : i32, i32
  }
  func.func @transform_3(%arg0: i32) -> (i32, i32) {
    %c0_i32 = arith.constant 0 : i32
    %c0_i32_0 = arith.constant 0 : i32
    %c0_i32_1 = arith.constant 0 : i32
    return %c0_i32, %c0_i32_0 : i32, i32
  }
  func.func @transform_4(%arg0: i32) -> (i32, i32) {
    %c0_i32 = arith.constant 0 : i32
    %c0_i32_0 = arith.constant 0 : i32
    %c0_i32_1 = arith.constant 0 : i32
    return %c0_i32, %c0_i32_0 : i32, i32
  }
  func.func @transform_5(%arg0: i32) -> (i32, i32) {
    %c0_i32 = arith.constant 0 : i32
    %c0_i32_0 = arith.constant 0 : i32
    %c0_i32_1 = arith.constant 0 : i32
    return %c0_i32, %c0_i32_0 : i32, i32
  }
  func.func @transform_6(%arg0: i32) -> (i32, i32) {
    %c0_i32 = arith.constant 0 : i32
    %c0_i32_0 = arith.constant 0 : i32
    %c0_i32_1 = arith.constant 0 : i32
    return %c0_i32, %c0_i32_0 : i32, i32
  }
  func.func @transform_7(%arg0: i32) -> (i32, i32) {
    %c0_i32 = arith.constant 0 : i32
    %c0_i32_0 = arith.constant 0 : i32
    %c0_i32_1 = arith.constant 0 : i32
    return %c0_i32, %c0_i32_0 : i32, i32
  }
  func.func @transform_8(%arg0: i32) -> (i32, i32) {
    %c0_i32 = arith.constant 0 : i32
    %c0_i32_0 = arith.constant 0 : i32
    %c0_i32_1 = arith.constant 0 : i32
    return %c0_i32, %c0_i32_0 : i32, i32
  }
  func.func @transform_9(%arg0: i32) -> (i32, i32) {
    %c0_i32 = arith.constant 0 : i32
    %c0_i32_0 = arith.constant 0 : i32
    %c0_i32_1 = arith.constant 0 : i32
    return %c0_i32, %c0_i32_0 : i32, i32
  }
  func.func @transform_10(%arg0: i32) -> (i32, i32) {
    %c0_i32 = arith.constant 0 : i32
    %c0_i32_0 = arith.constant 0 : i32
    %c0_i32_1 = arith.constant 0 : i32
    return %c0_i32, %c0_i32_0 : i32, i32
  }
  func.func @transform_11(%arg0: i32) -> (i32, i32) {
    %c0_i32 = arith.constant 0 : i32
    %c0_i32_0 = arith.constant 0 : i32
    %c0_i32_1 = arith.constant 0 : i32
    return %c0_i32, %c0_i32_0 : i32, i32
  }
  func.func @transform_12(%arg0: i32) -> (i32, i32) {
    %c0_i32 = arith.constant 0 : i32
    %c0_i32_0 = arith.constant 0 : i32
    %c0_i32_1 = arith.constant 0 : i32
    return %c0_i32, %c0_i32_0 : i32, i32
  }
  func.func @transform_13(%arg0: i32) -> (i32, i32) {
    %c0_i32 = arith.constant 0 : i32
    %c0_i32_0 = arith.constant 0 : i32
    %c0_i32_1 = arith.constant 0 : i32
    return %c0_i32, %c0_i32_0 : i32, i32
  }
  func.func @transform_14(%arg0: i32) -> (i32, i32) {
    %c0_i32 = arith.constant 0 : i32
    %c0_i32_0 = arith.constant 0 : i32
    %c0_i32_1 = arith.constant 0 : i32
    return %c0_i32, %c0_i32_0 : i32, i32
  }
  func.func @transform_15(%arg0: i32) -> (i32, i32) {
    %c0_i32 = arith.constant 0 : i32
    %c0_i32_0 = arith.constant 0 : i32
    %c0_i32_1 = arith.constant 0 : i32
    return %c0_i32, %c0_i32_0 : i32, i32
  }
  func.func @transform_16(%arg0: i32) -> (i32, i32) {
    %c0_i32 = arith.constant 0 : i32
    %c0_i32_0 = arith.constant 0 : i32
    %c0_i32_1 = arith.constant 0 : i32
    return %c0_i32, %c0_i32_0 : i32, i32
  }
  func.func @transform_17(%arg0: i32) -> (i32, i32) {
    %c0_i32 = arith.constant 0 : i32
    %c0_i32_0 = arith.constant 0 : i32
    %c0_i32_1 = arith.constant 0 : i32
    return %c0_i32, %c0_i32_0 : i32, i32
  }
  func.func @transform_18(%arg0: i32) -> (i32, i32) {
    %c0_i32 = arith.constant 0 : i32
    %c0_i32_0 = arith.constant 0 : i32
    %c0_i32_1 = arith.constant 0 : i32
    return %c0_i32, %c0_i32_0 : i32, i32
  }
  func.func @transform_19(%arg0: i32) -> (i32, i32) {
    %c0_i32 = arith.constant 0 : i32
    %c0_i32_0 = arith.constant 0 : i32
    %c0_i32_1 = arith.constant 0 : i32
    return %c0_i32, %c0_i32_0 : i32, i32
  }
  func.func @transform_20(%arg0: i32) -> (i32, i32) {
    %c0_i32 = arith.constant 0 : i32
    %c0_i32_0 = arith.constant 0 : i32
    %c0_i32_1 = arith.constant 0 : i32
    return %c0_i32, %c0_i32_0 : i32, i32
  }
  func.func @transform_21(%arg0: i32) -> (i32, i32) {
    %c0_i32 = arith.constant 0 : i32
    %c0_i32_0 = arith.constant 0 : i32
    %c0_i32_1 = arith.constant 0 : i32
    return %c0_i32, %c0_i32_0 : i32, i32
  }
  func.func @transform_22(%arg0: i32) -> (i32, i32) {
    %c0_i32 = arith.constant 0 : i32
    %c0_i32_0 = arith.constant 0 : i32
    %c0_i32_1 = arith.constant 0 : i32
    return %c0_i32, %c0_i32_0 : i32, i32
  }
  func.func @transform_23(%arg0: i32) -> (i32, i32, i32) {
    %c0_i32 = arith.constant 0 : i32
    %c0_i32_0 = arith.constant 0 : i32
    %c0_i32_1 = arith.constant 0 : i32
    return %arg0, %c0_i32, %c0_i32_0 : i32, i32, i32
  }
  func.func @transform_24(%arg0: i32) -> (i32, i32) {
    %c0_i32 = arith.constant 0 : i32
    %c0_i32_0 = arith.constant 0 : i32
    %c0_i32_1 = arith.constant 0 : i32
    return %c0_i32, %c0_i32_0 : i32, i32
  }
  func.func @transform_25(%arg0: i32) -> (i32, i32) {
    %c0_i32 = arith.constant 0 : i32
    %c0_i32_0 = arith.constant 0 : i32
    %c0_i32_1 = arith.constant 0 : i32
    return %c0_i32, %c0_i32_0 : i32, i32
  }
  func.func @transform_26(%arg0: i32) -> (i32, i32) {
    %c0_i32 = arith.constant 0 : i32
    %c0_i32_0 = arith.constant 0 : i32
    %c0_i32_1 = arith.constant 0 : i32
    return %c0_i32, %c0_i32_0 : i32, i32
  }
  func.func @transform_27(%arg0: i32) -> (i32, i32) {
    %c0_i32 = arith.constant 0 : i32
    %c0_i32_0 = arith.constant 0 : i32
    %c0_i32_1 = arith.constant 0 : i32
    return %c0_i32, %c0_i32_0 : i32, i32
  }
  func.func @transform_28(%arg0: i32) -> (i32, i32, i32) {
    %c0_i32 = arith.constant 0 : i32
    %c0_i32_0 = arith.constant 0 : i32
    %c0_i32_1 = arith.constant 0 : i32
    return %arg0, %c0_i32, %c0_i32_0 : i32, i32, i32
  }
}

</mosaic_0001>

<bundles_post_ra>
// kernel: squeeze.2
= control target key start
LH: loop header
LB: loop body
LE: loop exit
PB: predicated region body
PF: predicated region fallthrough
CT: control target
= control target key end

     0   :  { %vm8_vm0 = vcmask 15360   ;;  %s52_s0 = inlined_call_operand.vmem [shape: f32[2,4], index: 0, kind: input, shape index: {}]   ;;  %s53_s1 = inlined_call_operand.vmem [shape: f32[2,2,2], index: 1, kind: output, shape index: {}]  }
   0x1   :  { %v5_v0 = vld [vmem:[%s52_s0] sm:$0x3]  ;;  %s32_s0 = smov 126  }
   0x2   :  { %6 = vst [vmem:[#allocation1] sm:$0x3] %v5_v0 }
   0x9   :  { %v10_v1 = vld [vmem:[#allocation1] sm:$0x3]  }
   0xa   :  { %v7_v2 = vld [vmem:[#allocation1] sm:$0x3]   ;;  %11 = vrot.lane.b32.xlu0 %v10_v1, %s32_s0 }
   0xb   :  { %9 = vst.msk [vmem:[#allocation0] ss:$8 sm:$0x3] %vm8_vm0, %v7_v2  }
  0x7c   :  { %v12_v3 = vpop.permute.xlu0 %11  }
  0x7d   :  { %15 = vst.msk [vmem:[#allocation0 + $0x1] ss:$8 sm:$0x3] %vm8_vm0, %v12_v3  }
  0x84   :  { %v20_v4 = vld [vmem:[#allocation0] sm:$0x3]  ;;  %v25_v5 = vld [vmem:[#allocation0 + $0x8] sm:$0x3] }
  0x85   :  { %23 = vst [vmem:[%s53_s1] sm:$0x3] %v20_v4  ;;  %30 = vst [vmem:[%s53_s1 + $0x2] sm:$0x3] %v25_v5 }

// kernel: neg.7
= control target key start
LH: loop header
LB: loop body
LE: loop exit
PB: predicated region body
PF: predicated region fallthrough
CT: control target
= control target key end

     0   :  { %s24_s0 = inlined_call_operand.vmem [shape: f32[2,2], index: 0, kind: input, shape index: {}]   ;;  %s25_s1 = inlined_call_operand.vmem [shape: f32[2,2], index: 1, kind: output, shape index: {}]  }
   0x1   :  { %v2_v0 = vld [vmem:[%s24_s0] sm:$0x3] }
   0x2   :  { %v5_v1 = vxor.u32 2147483648, %v2_v0 }
   0x4   :  { %7 = vst [vmem:[%s25_s1] sm:$0x3] %v5_v1 }

// kernel: fwd.1
= control target key start
LH: loop header
LB: loop body
LE: loop exit
PB: predicated region body
PF: predicated region fallthrough
CT: control target
= control target key end

     0   :  { %s3002_s0 = inlined_call_operand.vmem [shape: f32[10,32], index: 0, kind: input, shape index: {}]   ;;  %s3003_s1 = inlined_call_operand.vmem [shape: f32[1,32], index: 1, kind: input, shape index: {}]   ;;  %s3004_s2 = inlined_call_operand.vmem [shape: f32[32,32], index: 2, kind: input, shape index: {}]   ;;  %s3005_s3 = inlined_call_operand.vmem [shape: f32[1,32], index: 3, kind: input, shape index: {}]   ;;  %s3006_s4 = inlined_call_operand.vmem [shape: f32[24,48], index: 4, kind: input, shape index: {}]   ;;  %s3007_s5 = inlined_call_operand.vmem [shape: f32[1,48], index: 5, kind: input, shape index: {}]   ;;  %s3008_s6 = inlined_call_operand.vmem [shape: f32[84,32], index: 6, kind: input, shape index: {}]   ;;  %s3009_s7 = inlined_call_operand.vmem [shape: f32[1,32], index: 7, kind: input, shape index: {}]   ;;  %s3010_s8 = inlined_call_operand.vmem [shape: f32[32,28], index: 8, kind: input, shape index: {}]   ;;  %s3011_s9 = inlined_call_operand.vmem [shape: f32[1,28], index: 9, kind: input, shape index: {}]   ;;  %s3012_s10 = inlined_call_operand.vmem [shape: f32[16,8], index: 10, kind: input, shape index: {}]   ;;  %s3013_s11 = inlined_call_operand.vmem [shape: f32[16,8], index: 11, kind: input, shape index: {}]   ;;  %s3014_s12 = inlined_call_operand.vmem [shape: f32[16,4], index: 12, kind: input, shape index: {}]   ;;  %s3015_s13 = inlined_call_operand.vmem [shape: f32[4,16], index: 13, kind: input, shape index: {}]   ;;  %s3016_s14 = inlined_call_operand.vmem [shape: f32[4,8], index: 14, kind: input, shape index: {}]   ;;  %s3017_s15 = inlined_call_operand.vmem [shape: f32[8,4], index: 15, kind: input, shape index: {}]   ;;  %s3018_s16 = inlined_call_operand.vmem [shape: f32[8,4], index: 16, kind: input, shape index: {}]   ;;  %s3019_s17 = inlined_call_operand.vmem [shape: f32[4,8], index: 17, kind: input, shape index: {}]   ;;  %s3020_s18 = inlined_call_operand.vmem [shape: f32[4,4], index: 18, kind: input, shape index: {}]   ;;  %s3021_s19 = inlined_call_operand.vmem [shape: f32[8,10], index: 19, kind: input, shape index: {}]   ;;  %s3022_s20 = inlined_call_operand.vmem [shape: f32[4,8], index: 20, kind: input, shape index: {}]   ;;  %s3023_s21 = inlined_call_operand.vmem [shape: f32[8,16], index: 21, kind: input, shape index: {}]   ;;  %s3024_s22 = inlined_call_operand.vmem [shape: f32[4,16], index: 22, kind: input, shape index: {}]   ;;  %s3025_s23 = inlined_call_operand.vmem [shape: f32[2,4,4], index: 23, kind: input, shape index: {}]   ;;  %s3026_s24 = inlined_call_operand.vmem [shape: f32[8,10], index: 24, kind: output, shape index: {0}]   ;;  %s3027_s25 = inlined_call_operand.vmem [shape: f32[4,8], index: 25, kind: output, shape index: {1}]   ;;  %s3028_s26 = inlined_call_operand.vmem [shape: f32[8,16], index: 26, kind: output, shape index: {2}]   ;;  %s3029_s27 = inlined_call_operand.vmem [shape: f32[4,16], index: 27, kind: output, shape index: {3}]   ;;  %s3030_s28 = inlined_call_operand.vmem [shape: f32[2,4,128], index: 28, kind: output, shape index: {4}]  }
   0x1   :  { %3044 = sst [smem:[#allocation2_spill]] %s3002_s0 }
   0x2   :  { %3045 = sst [smem:[#allocation3_spill]] %s3003_s1 }
   0x3   :  { %3046 = sst [smem:[#allocation4_spill]] %s3004_s2 }
   0x4   :  { %3047 = sst [smem:[#allocation5_spill]] %s3005_s3 }
   0x5   :  { %3048 = sst [smem:[#allocation6_spill]] %s3006_s4 }
   0x6   :  { %3049 = sst [smem:[#allocation7_spill]] %s3007_s5 }
   0x7   :  { %3050 = sst [smem:[#allocation8_spill]] %s3008_s6 }
   0x8   :  { %3051 = sst [smem:[#allocation9_spill]] %s3009_s7 }
   0x9   :  { %3052 = sst [smem:[#allocation10_spill]] %s3010_s8  ;;  %s2692_s8 = smov 0  }
   0xa   :  { %3053 = sst [smem:[#allocation11_spill]] %s3011_s9 }
   0xb   :  { %3054 = sst [smem:[#allocation12_spill]] %s3012_s10 }
   0xc   :  { %3055 = sst [smem:[#allocation13_spill]] %s3013_s11 }
   0xd   :  { %3056 = sst [smem:[#allocation14_spill]] %s3014_s12 }
   0xe LB: > { %s2285_s5 = sadd.s32 4294967295, %s2532_s8   ;;  %p2289_p0 = scmp.ge.s32.totalorder %s2532_s8, 1  ;;  %s2532_s8 = sphi %s2692_s8, %s39_s8  }
   0xf   : > { %p750_p1 = scmp.lt.s32.totalorder %s2532_s8, 3 }
  0x11   : > { %p751_p2 = pnand %p2289_p0, %p750_p1 }
  0x12   : > { %p822_p3 = scmp.lt.s32.totalorder (!%p751_p2), %s2285_s5, 1  ;;  %p2292_p4 = scmp.ne.s32.totalorder (!%p751_p2), %s2285_s5, 0 }
  0x13   : > { %754 = sbr.rel (%p751_p2) target bundleno = 2748 (0xabc), region = 116 }
  0x18   : > { %s823_s9 = scalar_select %p822_p3, %s2285_s5, 1 }
  0x19   : > { %833 = sbr.rel (%p2292_p4) target bundleno = 35 (0x23), region = 120 }
  0x1a   : > { %s2290_s30 = sshll.u32 %s823_s9, 2 }
  0x1b   : > { %s2703_s10 = scalar_lea.vmem %s3025_s23, %s2290_s30  ;;  %s2708_s29 = scalar_lea.vmem %s3030_s28, %s2290_s30 }
  0x1e   : > { %v834_v0 = vld [vmem:[%s3021_s19] sm:$0xff]  ;;  %vm835_vm0 = vcmask 80896   ;;  %vm838_vm1 = vcmask 60416   ;;  %vm841_vm2 = vcmask 130048   ;;  %vm844_vm3 = vcmask 125952  }
  0x1f   : > { %v837_v1 = vld [vmem:[%s3022_s20] sm:$0xf]  ;;  %836 = vst.msk [vmem:[%s3026_s24] sm:$0xff] %vm835_vm0, %v834_v0 }
  0x20   : > { %v840_v2 = vld [vmem:[%s3023_s21] sm:$0xff]  ;;  %839 = vst.msk [vmem:[%s3027_s25] sm:$0xf] %vm838_vm1, %v837_v1 }
  0x21   : > { %v843_v3 = vld [vmem:[%s3024_s22] sm:$0xf]  ;;  %842 = vst.msk [vmem:[%s3028_s26] sm:$0xff] %vm841_vm2, %v840_v2 }
  0x22   : > { %845 = vst.msk [vmem:[%s3029_s27] sm:$0xf] %vm844_vm3, %v843_v3 }
  0x23 PF: > { %s3057_s5 = sld [smem:[#allocation12_spill]]  ;;  %vm853_vm4 = vcmask 64512   ;;  %s3039_s6 = smov 126   ;;  %vm1096_vm5 = vcmask 1045504   ;;  %v2535_v16 = vmov 0   ;;  %v2537_v41 = vmov 0.0  }
  0x24   : > { %s3058_s11 = sld [smem:[#allocation13_spill]]  ;;  %2507 = vset.pattern.permute.xlu1 %v2535_v16  ;;  %2506 = vset.pattern.permute.xlu0 %v2535_v16  ;;  %s2536_s9 = smov 127   ;;  %vm2538_vm6 = vmmov 0   ;;  %v1064_v43 = vlaneseq  ;;  %vm1204_vm7 = vcmask 261120   ;;  %vm1457_vm8 = vcmask 1043456  }
  0x25   : > { %s3059_s3 = sld [smem:[#allocation14_spill]]  ;;  %s2539_s7 = smov 8   ;;  %vm1453_vm9 = vcmask 31744   ;;  %vm1306_vm10 = vcmask 130048   ;;  %vm1546_vm11 = vcmask 195584   ;;  %vm1791_vm12 = vcmask 162816  }
  0x26   : > { %v2737_v4 = vld [vmem:[%s3026_s24] sm:$0xff]  ;;  %s3060_s12 = sld [smem:[#allocation2_spill]]  ;;  %v1065_v44 = vshrl.u32 %v1064_v43, 7  ;;  %s2540_s30 = smov 4   ;;  %vm1793_vm13 = vcmask 424960   ;;  %vm1813_vm14 = vcmask 687104  }
  0x27   : > { %2375 = vmatprep.subr.mxu0 %v2737_v4  ;;  %2380 = vmatprep.subr.mxu1 %v2737_v4  ;;  %s3061_s2 = sld [smem:[#allocation4_spill]]  ;;  %vm1981_vm2 = vcmask 224256   ;;  %vm2192_vm3 = vcmask 11264  }
  0x28   : > { %2376 = vmatpush3.msra.mxu0 %v2737_v4  ;;  %2381 = vmatpush3.msra.mxu1 %v2737_v4  ;;  %v848_v42 = vld [vmem:[%s3028_s26] sm:$0xff]  ;;  %v1082_v47 = vsub.s32 1, %v1065_v44  ;;  %v1066_v48 = vsub.s32 0, %v1065_v44  ;;  %s3062_s1 = sld [smem:[#allocation3_spill]] }
  0x29   : > { %v851_v5 = vld [vmem:[%s3057_s5] sm:$0xff]  ;;  %v852_v7 = vld [vmem:[%s3057_s5 + $0x8] sm:$0xff]  ;;  %s3064_s0 = sld [smem:[#allocation6_spill]] }
  0x2a   : > { %v935_v6 = vld [vmem:[%s3058_s11] sm:$0xff]  ;;  %v936_v8 = vld [vmem:[%s3058_s11 + $0x8] sm:$0xff]  ;;  %2377 = vmatprep.mubr.msk.f32.mxu0 %vm853_vm4, %v851_v5 }
  0x2b   : > { %v1018_v9 = vld [vmem:[%s3059_s3] sm:$0xff]  ;;  %2382 = vmatprep.mubr.msk.f32.mxu1 %vm853_vm4, %v935_v6  ;;  %2378 = vmatmul.mubr.msk.f32.vlgmr.msra.gmra.mxu0 %vm853_vm4, %v852_v7  ;;  %v1019_v10 = vld [vmem:[%s3059_s3 + $0x8] sm:$0xff]  ;;  %s3066_s3 = sld [smem:[#allocation8_spill]] }
  0x2c   : > { %2383 = vmatmul.mubr.msk.f32.vlgmr.msra.gmra.mxu1 %vm853_vm4, %v936_v8  ;;  %1034 = vrot.lane.b32.xlu1 %v1018_v9, %s3039_s6  ;;  %v2770_v11 = vld [vmem:[%s3060_s12] sm:$0xff]  ;;  %v1053_v12 = vld [vmem:[%s3060_s12 + $0x8] sm:$0x3] }
  0x2d   : > { %v1097_v13 = vrot.slane %v2770_v11, 2  ;;  %v1098_v14 = vrot.slane %v1053_v12, 2  ;;  %v1196_v37 = vld [vmem:[%s3061_s2 + $0x18] sm:$0xff]  ;;  %v1195_v38 = vld [vmem:[%s3061_s2 + $0x10] sm:$0xff]  ;;  %v1194_v39 = vld [vmem:[%s3061_s2 + $0x8] sm:$0xff]  ;;  %v1083_v51 = vrot.slane %v2770_v11, %v1082_v47  ;;  %v1067_v52 = vrot.slane %v2770_v11, %v1066_v48 }
  0x2e   : > { %2390 = vmatprep.subr.mxu1 %v1196_v37  ;;  %v1193_v40 = vld [vmem:[%s3061_s2] sm:$0xff]  ;;  %s3068_s2 = sld [smem:[#allocation9_spill]] }
  0x2f   : > { %v1099_v15 = vsel %vm1096_vm5, %v1097_v13, %v1098_v14  ;;  %2391 = vmatpush3.msra.mxu1 %v1196_v37  ;;  %v2299_v60 = vld [vmem:[%s3062_s1] ss:$0 sm:$0xff]  ;;  %s2541_s1 = smov 20   ;;  %vm2088_vm5 = vcmask 15360  }
  0x30   : > { %1036 = vrot.lane.b32.xlu1 %v1019_v10, %s3039_s6  ;;  %2385 = vmatprep.subr.mxu0 %v1099_v15  ;;  %v847_v5 = vld [vmem:[%s3027_s25] sm:$0xf] }
  0x31   : > { %2386 = vmatpush3.msra.mxu0 %v1099_v15  ;;  %2392 = vmatprep.subr.mxu1 %v1195_v38  ;;  %v1452_v6 = vld [vmem:[%s3017_s15] sm:$0xff] }
  0x32   : > { %2393 = vmatpush3.msra.mxu1 %v1195_v38  ;;  %2401 = vmatprep.subr.mxu0 %v2537_v41  ;;  %v1536_v37 = vld [vmem:[%s3064_s0] sm:$0xff] }
  0x33   : > { %2394 = vmatprep.subr.mxu1 %v1194_v39 }
  0x34   : > { %2395 = vmatpush3.msra.mxu1 %v1194_v39  ;;  %v849_v39 = vld [vmem:[%s3029_s27] sm:$0xf] }
  0x35   : > { %2396 = vmatprep.subr.mxu1 %v1193_v40 }
  0x36   : > { %2397 = vmatpush3.msra.mxu1 %v1193_v40 }
  0x37   : > { %2415 = vmatprep.subr.mxu1 %v2537_v41 }
  0x9e   : > { %v1035_v17 = vpop.permute.xlu1 %1034 }
  0xa2   : > { %v1037_v20 = vpop.permute.xlu1 %1036 }
  0xeb   : > { %v2379_v18 = vpop.f32.mrf.mxu0 }
  0xec   : > { %v2384_v19 = vpop.f32.mrf.mxu1 }
  0xed   : > { %v926_v21 = vpop.f32.mrf.mxu0  ;;  %v1041_v24 = vmul.f32 %v2384_v19, %v1037_v20  ;;  %v1021_v26 = vmul.f32 %v2384_v19, %v1019_v10 }
  0xee   : > { %v1009_v22 = vpop.f32.mrf.mxu1  ;;  %1090 = vrot.lane.b32.xlu0 %v926_v21, %s3039_s6 }
  0xef   : > { %v1040_v23 = vmul.f32 %v1035_v17, %v1009_v22  ;;  %v1020_v25 = vmul.f32 %v1018_v9, %v1009_v22 }
  0xf1   : > { %1044 = vrot.lane.b32.xlu1 %v1040_v23, %s2536_s9 }
  0xf2   : > { %1092 = vrot.lane.b32.xlu0 %v2379_v18, %s3039_s6  ;;  %s3063_s6 = sld [smem:[#allocation5_spill]] }
  0xf5   : > { %1046 = vrot.lane.b32.xlu1 %v1041_v24, %s2536_s9 }
  0xf6   : > { %1024 = vrot.lane.b32.xlu0 %v1020_v25, %s2536_s9 }
  0xf8   : > { %v2300_v7 = vld [vmem:[%s3063_s6] ss:$0 sm:$0xff]  ;;  %s3065_s6 = sld [smem:[#allocation7_spill]] }
  0xfa   : > { %1026 = vrot.lane.b32.xlu0 %v1021_v26, %s2536_s9  ;;  %s2546_s9 = smov 124  }
 0x160   : > { %v1091_v27 = vpop.permute.xlu0 %1090 }
 0x161   : > { %2387 = vmatprep.mubr.msk.f32.mxu0 %vm853_vm4, %v1091_v27 }
 0x163   : > { %v1045_v28 = vpop.permute.xlu1 %1044 }
 0x164   : > { %v1050_v29 = vadd.f32 %v1045_v28, %v1040_v23  ;;  %v1093_v30 = vpop.permute.xlu0 %1092 }
 0x165   : > { %2388 = vmatmul.mubr.msk.f32.vlgmr.msra.gmra.mxu0 %vm853_vm4, %v1093_v30 }
 0x166   : > { %1072 = vperm.xlu1 %2507, %v1050_v29   ;;  %2405 = vmatprep.mubr.msk.f32.mxu0 %vm2538_vm6, %v2537_v41 }
 0x167   : > { %v1047_v33 = vpop.permute.xlu1 %1046 }
 0x168   : > { %v1025_v31 = vpop.permute.xlu0 %1024  ;;  %v1051_v35 = vadd.f32 %v1047_v33, %v1041_v24  ;;  %v1303_v33 = vld [vmem:[%s3015_s13] sm:$0xf] }
 0x169   : > { %v1030_v32 = vadd.f32 %v1025_v31, %v1020_v25 }
 0x16b   : > { %1056 = vperm.xlu0 %2506, %v1030_v32  }
 0x16c   : > { %v1027_v34 = vpop.permute.xlu0 %1026 }
 0x16d   : > { %v1031_v36 = vadd.f32 %v1027_v34, %v1021_v26  ;;  %v1538_v34 = vld [vmem:[%s3064_s0 + $0x10] sm:$0xff] }
 0x16f   : > { %1077 = vperm.xlu0 %2506, %v1051_v35   ;;  %1061 = vperm.xlu1 %2507, %v1031_v36   ;;  %v1537_v35 = vld [vmem:[%s3064_s0 + $0x8] sm:$0xff]  ;;  %s2545_s0 = smov 116  }
 0x173   : > { %1532 = vrot.lane.b32.xlu1 %v848_v42, %s2539_s7  ;;  %1779 = vrot.lane.b32.xlu0 %v849_v39, %s2540_s30  ;;  %s3067_s30 = sld [smem:[#allocation10_spill]]  ;;  %s2542_s7 = smov 52  }
 0x1e1   : > { %v1073_v46 = vpop.permute.xlu1 %1072 }
 0x1e2   : > { %v1084_v56 = vmul.f32 %v1083_v51, %v1073_v46  ;;  %v2307_v46 = vld [vmem:[%s3065_s6] ss:$0 sm:$0xff]  ;;  %s3072_s6 = smov 126  }
 0x1e6   : > { %v1057_v45 = vpop.permute.xlu0 %1056 }
 0x1e7   : > { %v1068_v55 = vmul.f32 %v1067_v52, %v1057_v45 }
 0x1e9   : > { %v1086_v61 = vadd.f32 %v1084_v56, %v1068_v55 }
 0x1ea   : > { %v1062_v49 = vpop.permute.xlu1 %1061  ;;  %v1078_v50 = vpop.permute.xlu0 %1077 }
 0x1eb   : > { %v1069_v53 = vmul.f32 %v1067_v52, %v1062_v49  ;;  %v1085_v54 = vmul.f32 %v1083_v51, %v1078_v50 }
 0x1ed   : > { %v1087_v57 = vadd.f32 %v1085_v54, %v1069_v53 }
 0x1ee   : > { %v1533_v36 = vpop.permute.xlu1 %1532 }
 0x225   : > { %v2389_v58 = vpop.f32.mrf.mxu0 }
 0x226   : > { %v1181_v59 = vadd.f32 %v2389_v58, %v1087_v57 }
 0x227   : > { %v1171_v62 = vpop.f32.mrf.mxu0 }
 0x228   : > { %v1180_v63 = vadd.f32 %v1171_v62, %v1086_v61  ;;  %v1190_v0 = vadd.f32 %v2299_v60, %v1181_v59 }
 0x22a   : > { %v1189_v1 = vadd.f32 %v2299_v60, %v1180_v63  ;;  %v1192_v3 = vmax.f32 %v1190_v0, 0.0  ;;  %v1631_v0 = vld [vmem:[%s3016_s14] sm:$0xf] }
 0x22c   : > { %v1191_v2 = vmax.f32 %v1189_v1, 0.0  ;;  %v1805_v1 = vld [vmem:[%s3066_s3 + $0x50] sm:$0xf] }
 0x22e   : > { %2398 = vmatprep.mubr.msk.f32.mxu1 %vm1204_vm7, %v1191_v2  ;;  %v1804_v2 = vld [vmem:[%s3066_s3 + $0x48] sm:$0xff] }
 0x22f   : > { %2399 = vmatmul.mubr.msk.f32.vlgmr.msra.gmra.mxu1 %vm1204_vm7, %v1192_v3  ;;  %v1803_v3 = vld [vmem:[%s3066_s3 + $0x40] sm:$0xff] }
 0x230   : > { %2416 = vmatpush3.msk.msra.mxu1 %vm1457_vm8, %v847_v5  ;;  %2417 = vmatprep.mubr.msk.f32.mxu1 %vm2538_vm6, %v2537_v41  ;;  %v1802_v5 = vld [vmem:[%s3066_s3 + $0x38] sm:$0xff] }
 0x231   : > { %2429 = vmatprep.subr.mxu1 %v2537_v41 }
 0x233   : > { %2418 = vmatmul.mubr.msk.f32.vlgmr.msra.gmra.mxu1 %vm1453_vm9, %v1452_v6  ;;  %v1801_v6 = vld [vmem:[%s3066_s3 + $0x30] sm:$0xff] }
 0x234   : > { %2431 = vmatprep.mubr.msk.f32.mxu1 %vm2538_vm6, %v2537_v41 }
 0x2ef   : > { %v2400_v8 = vpop.f32.mrf.mxu1 }
 0x2f0   : > { %v1283_v9 = vadd.f32 %v2400_v8, %v2300_v7  ;;  %v1799_v8 = vld [vmem:[%s3066_s3 + $0x20] sm:$0xff] }
 0x2f1   : > { %v1277_v10 = vpop.f32.mrf.mxu1 }
 0x2f2   : > { %v1278_v11 = vadd.f32 %v2300_v7, %v1277_v10  ;;  %v1287_v13 = vsel %vm1204_vm7, %v1283_v9, -inf  ;;  %v1800_v7 = vld [vmem:[%s3066_s3 + $0x28] sm:$0xff]  ;;  %v1797_v10 = vld [vmem:[%s3066_s3 + $0x10] sm:$0xff] }
 0x2f3   : > { %v1527_v12 = vpop.f32.mrf.mxu1 }
 0x2f4   : > { %v1286_v14 = vsel %vm1204_vm7, %v1278_v11, -inf  ;;  %v1535_v38 = vsel %vm853_vm4, %v1527_v12, %v1533_v36 }
 0x2f5   : > { %v1288_v15 = vmax.f32 %v1286_v14, %v1287_v13  ;;  %v2419_v16 = vpop.f32.mrf.mxu1 }
 0x2f6   : > { %v1795_v16 = vld [vmem:[%s3066_s3] sm:$0xff] }
 0x2f7   : > { %v1289_v17 = vrot.slane %v1288_v15, 4 }
 0x2f9   : > { %v1290_v18 = vmax.f32 %v1288_v15, %v1289_v17  ;;  %v1894_v17 = vld [vmem:[%s3067_s30 + $0x18] sm:$0xff] }
 0x2fb   : > { %v1291_v19 = vrot.slane %v1290_v18, 2 }
 0x2fd   : > { %v1292_v20 = vmax.f32 %v1290_v18, %v1291_v19 }
 0x2ff   : > { %v1293_v21 = vrot.slane %v1292_v20, 1 }
 0x301   : > { %v1294_v22 = vmax.f32 %v1292_v20, %v1293_v21  ;;  %v850_v20 = vld [vmem:[%s3020_s18] sm:$0xf]  ;;  %v1780_v21 = vpop.permute.xlu0 %1779 }
 0x303   : > { %v1295_v23 = vsub.f32 %v1278_v11, %v1294_v22  ;;  %v1296_v24 = vsub.f32 %v1283_v9, %v1294_v22  ;;  %v1790_v22 = vsel %vm1453_vm9, %v850_v20, %v1780_v21 }
 0x305   : > { %v1297_v25 = vmax.f32 %v1295_v23, -80.0  ;;  %v1298_v26 = vmax.f32 %v1296_v24, -80.0 }
 0x307   : > { %v1299_v27 = vmul.f32 1.442695, %v1297_v25  ;;  %v1301_v28 = vmul.f32 1.442695, %v1298_v26 }
 0x309   : > { %2508 = vpow2.f32 %v1299_v27  ;;  %v1893_v27 = vld [vmem:[%s3067_s30 + $0x10] sm:$0xff] }
 0x30a   : > { %2510 = vpow2.f32 %v1301_v28  ;;  %v1892_v28 = vld [vmem:[%s3067_s30 + $0x8] sm:$0xff] }
 0x316   : > { %v2509_v29 = vpop.eup %2508 }
 0x317   : > { %v2511_v30 = vpop.eup %2510  ;;  %v1304_v32 = vmul.f32 %v2509_v29, %v1278_v11  ;;  %v1796_v11 = vld [vmem:[%s3066_s3 + $0x8] sm:$0xff] }
 0x318   : > { %v1305_v31 = vmul.f32 %v2511_v30, %v1283_v9  ;;  %v1798_v9 = vld [vmem:[%s3066_s3 + $0x18] sm:$0xff] }
 0x31a   : > { %2402 = vmatpush3.msra.mxu0 %v1305_v31 }
 0x31b   : > { %2403 = vmatprep.subr.mxu0 %v2537_v41 }
 0x31c   : > { %2404 = vmatpush3.msra.mxu0 %v1304_v32 }
 0x31d   : > { %2406 = vmatmul.mubr.msk.f32.vlgmr.msra.gmra.mxu0 %vm1306_vm10, %v1303_v33  ;;  %2408 = vmatprep.subr.mxu0 %v2537_v41 }
 0x31e   : > { %2409 = vmatpush3.msra.mxu0 %v2511_v30  ;;  %2412 = vmatprep.mubr.msk.f32.mxu0 %vm2538_vm6, %v2537_v41  ;;  %v2311_v30 = vld [vmem:[%s3068_s2] ss:$0 sm:$0xff]  ;;  %s2544_s2 = smov 96  }
 0x31f   : > { %2410 = vmatprep.subr.mxu0 %v2537_v41 }
 0x320   : > { %2411 = vmatpush3.msra.mxu0 %v2509_v29  ;;  %v1891_v29 = vld [vmem:[%s3067_s30] sm:$0xff] }
 0x321   : > { %2413 = vmatmul.mubr.msk.f32.vlgmr.msra.gmra.mxu0 %vm1306_vm10, %v1303_v33  ;;  %2420 = vmatprep.subr.mxu0 %v2537_v41 }
 0x322   : > { %2421 = vmatpush3.msra.mxu0 %v1538_v34  ;;  %2426 = vmatprep.mubr.msk.f32.mxu0 %vm2538_vm6, %v2537_v41 }
 0x323   : > { %2422 = vmatprep.subr.mxu0 %v2537_v41 }
 0x324   : > { %2423 = vmatpush3.msra.mxu0 %v1537_v35  ;;  %v2947_v35 = vand.u32 127, %v1064_v43 }
 0x325   : > { %2424 = vmatprep.subr.mxu0 %v2537_v41 }
 0x326   : > { %2425 = vmatpush3.msra.mxu0 %v1536_v37  ;;  %vm1977_vm15 = vcmp.ge.s32.totalorder %v2947_v35, 4  ;;  %vm1978_vm0 = vcmp.lt.s32.totalorder %v2947_v35, 12 }
 0x327   : > { %2427 = vmatmul.mubr.msk.f32.vlgmr.msra.gmra.mxu0 %vm1546_vm11, %v1535_v38  ;;  %2439 = vmatprep.subr.mxu0 %v2537_v41  ;;  %vm2954_vm1 = vmand %vm1977_vm15, %vm1978_vm0 }
 0x328   : > { %2461 = vmatprep.mubr.msk.f32.mxu0 %vm2538_vm6, %v2537_v41  ;;  %2440 = vmatpush3.msk.msra.mxu0 %vm1457_vm8, %v1805_v1 }
 0x329   : > { %2441 = vmatprep.subr.mxu0 %v2537_v41 }
 0x32a   : > { %2442 = vmatpush3.msra.mxu0 %v1804_v2 }
 0x32b   : > { %2443 = vmatprep.subr.mxu0 %v2537_v41 }
 0x32c   : > { %2444 = vmatpush3.msra.mxu0 %v1803_v3 }
 0x32d   : > { %2445 = vmatprep.subr.mxu0 %v2537_v41 }
 0x32e   : > { %2446 = vmatpush3.msra.mxu0 %v1802_v5 }
 0x32f   : > { %2447 = vmatprep.subr.mxu0 %v2537_v41 }
 0x330   : > { %2448 = vmatpush3.msra.mxu0 %v1801_v6 }
 0x331   : > { %2449 = vmatprep.subr.mxu0 %v2537_v41 }
 0x332   : > { %2450 = vmatpush3.msra.mxu0 %v1800_v7 }
 0x333   : > { %2451 = vmatprep.subr.mxu0 %v2537_v41 }
 0x334   : > { %2452 = vmatpush3.msra.mxu0 %v1799_v8 }
 0x335   : > { %2453 = vmatprep.subr.mxu0 %v2537_v41 }
 0x336   : > { %2454 = vmatpush3.msra.mxu0 %v1798_v9 }
 0x337   : > { %2455 = vmatprep.subr.mxu0 %v2537_v41 }
 0x338   : > { %2456 = vmatpush3.msra.mxu0 %v1797_v10  ;;  %v2112_v10 = vld [vmem:[%s3019_s17] sm:$0xf] }
 0x339   : > { %2457 = vmatprep.subr.mxu0 %v2537_v41 }
 0x33a   : > { %2458 = vmatpush3.msra.mxu0 %v1796_v11 }
 0x33b   : > { %2459 = vmatprep.subr.mxu0 %v2537_v41 }
 0x33c   : > { %2460 = vmatpush3.msra.mxu0 %v1795_v16 }
 0x3dd   : > { %v1376_v40 = vpop.f32.mrf.mxu0 }
 0x3df   : > { %v2407_v42 = vpop.f32.mrf.mxu0 }
 0x3e1   : > { %v1446_v44 = vpop.f32.mrf.mxu0 }
 0x3e2   : > { %2512 = vrcp.f32 %v1446_v44 }
 0x3e3   : > { %v2414_v45 = vpop.f32.mrf.mxu0 }
 0x3e7   : > { %v1616_v47 = vpop.f32.mrf.mxu0 }
 0x3e8   : > { %v1617_v48 = vadd.f32 %v2307_v46, %v1616_v47 }
 0x3e9   : > { %v2428_v49 = vpop.f32.mrf.mxu0 }
 0x3ea   : > { %2514 = vtanh.f32 %v1617_v48 }
 0x3ef   : > { %v2513_v50 = vpop.eup %2512 }
 0x3f0   : > { %v1451_v51 = vmul.f32 %v2513_v50, %v1376_v40  ;;  %v1995_v50 = vld [vmem:[%s2703_s10] sm:$0xf]  ;;  %s2543_s10 = smov 2  }
 0x3f2   : > { %1783 = vrot.lane.b32.xlu1 %v1451_v51, %s2541_s1 }
 0x3f7   : > { %v2859_v52 = vpop.eup %2514 }
 0x3f8   : > { %v1621_v53 = vsel %vm1204_vm7, %v2859_v52, -inf }
 0x3f9   : > { %v1622_v54 = vrot.slane %v1621_v53, 4 }
 0x3fb   : > { %v1623_v55 = vmax.f32 %v1621_v53, %v1622_v54  ;;  %v1996_v53 = vmul.f32 0.1, %v1995_v50 }
 0x3fd   : > { %v1624_v56 = vrot.slane %v1623_v55, 2 }
 0x3ff   : > { %v1625_v57 = vmax.f32 %v1623_v55, %v1624_v56 }
 0x401   : > { %v1626_v58 = vrot.slane %v1625_v57, 1 }
 0x403   : > { %v1627_v59 = vmax.f32 %v1625_v57, %v1626_v58  ;;  %v1998_v58 = vld [vmem:[%s3018_s16] sm:$0xff] }
 0x405   : > { %v1628_v60 = vsub.f32 %v2859_v52, %v1627_v59 }
 0x407   : > { %v1629_v61 = vmul.f32 1.442695, %v1628_v60 }
 0x409   : > { %2516 = vpow2.f32 %v1629_v61 }
 0x416   : > { %v2517_v62 = vpop.eup %2516 }
 0x417   : > { %v1632_v63 = vmul.f32 %v2517_v62, %v2859_v52 }
 0x419   : > { %2430 = vmatpush3.msra.mxu1 %v1632_v63  ;;  %v2196_v63 = vmul.f32 %v1995_v50, %v1995_v50 }
 0x41a   : > { %2432 = vmatmul.mubr.msk.f32.vlgmr.msra.gmra.mxu1 %vm853_vm4, %v1631_v0  ;;  %2434 = vmatprep.subr.mxu1 %v2537_v41 }
 0x41b   : > { %2435 = vmatpush3.msra.mxu1 %v2517_v62  ;;  %2436 = vmatprep.mubr.msk.f32.mxu1 %vm2538_vm6, %v2537_v41 }
 0x41c   : > { %2464 = vmatprep.subr.mxu1 %v2537_v41 }
 0x41e   : > { %2437 = vmatmul.mubr.msk.f32.vlgmr.msra.gmra.mxu1 %vm853_vm4, %v1631_v0  ;;  %v2197_v0 = vmul.f32 -0.5, %v2196_v63 }
 0x41f   : > { %2472 = vmatprep.mubr.msk.f32.mxu1 %vm2538_vm6, %v2537_v41  ;;  %2465 = vmatpush3.msra.mxu1 %v1894_v17 }
 0x420   : > { %2466 = vmatprep.subr.mxu1 %v2537_v41  ;;  %v2319_v1 = vadd.f32 2.3025851, %v2197_v0 }
 0x421   : > { %2467 = vmatpush3.msra.mxu1 %v1893_v27 }
 0x422   : > { %2468 = vmatprep.subr.mxu1 %v2537_v41  ;;  %v2320_v2 = vadd.f32 -0.9189385, %v2319_v1 }
 0x423   : > { %2469 = vmatpush3.msra.mxu1 %v1892_v28 }
 0x424   : > { %2470 = vmatprep.subr.mxu1 %v2537_v41  ;;  %v2200_v3 = vsel %vm2192_vm3, %v2320_v2, 0.0 }
 0x425   : > { %2471 = vmatpush3.msra.mxu1 %v1891_v29 }
 0x426   : > { %2475 = vmatprep.subr.mxu1 %v2537_v41 }
 0x464   : > { %v1784_v23 = vpop.permute.xlu1 %1783 }
 0x465   : > { %v1792_v24 = vsel %vm1791_vm12, %v1790_v22, %v1784_v23 }
 0x4da   : > { %v1702_v12 = vpop.f32.mrf.mxu1 }
 0x4dc   : > { %v2433_v13 = vpop.f32.mrf.mxu1 }
 0x4de   : > { %v1772_v14 = vpop.f32.mrf.mxu1 }
 0x4df   : > { %2518 = vrcp.f32 %v1772_v14 }
 0x4e0   : > { %v2438_v15 = vpop.f32.mrf.mxu1 }
 0x4ec   : > { %v2519_v18 = vpop.eup %2518 }
 0x4ed   : > { %v1777_v19 = vmul.f32 %v2519_v18, %v1702_v12 }
 0x4ef   : > { %1787 = vrot.lane.b32.xlu0 %v1777_v19, %s2542_s7  ;;  %s3069_s7 = sld [smem:[#allocation11_spill]] }
 0x4f5   : > { %v2314_v36 = vld [vmem:[%s3069_s7] ss:$0 sm:$0xff] }
 0x561   : > { %v1788_v25 = vpop.permute.xlu0 %1787 }
 0x562   : > { %v1794_v26 = vsel %vm1793_vm13, %v1792_v24, %v1788_v25 }
 0x563   : > { %2462 = vmatmul.mubr.msk.f32.vlgmr.msra.gmra.mxu0 %vm1813_vm14, %v1794_v26 }
 0x623   : > { %v1886_v31 = vpop.f32.mrf.mxu0 }
 0x624   : > { %v1887_v32 = vadd.f32 %v2311_v30, %v1886_v31 }
 0x625   : > { %v2463_v33 = vpop.f32.mrf.mxu0 }
 0x626   : > { %v1890_v34 = vmax.f32 %v1887_v32, 0.0 }
 0x628   : > { %2473 = vmatmul.mubr.msk.f32.vlgmr.msra.gmra.mxu1 %vm1204_vm7, %v1890_v34  ;;  %vm2094_vm7 = vcmask 80896  }
 0x629   : > { %2477 = vmatprep.mubr.msk.f32.mxu1 %vm2538_vm6, %v2537_v41 }
 0x6e8   : > { %v1971_v37 = vpop.f32.mrf.mxu1 }
 0x6e9   : > { %v1972_v39 = vadd.f32 %v2314_v36, %v1971_v37 }
 0x6ea   : > { %v2474_v40 = vpop.f32.mrf.mxu1 }
 0x6eb   : > { %v1980_v43 = vsel %vm2954_vm1, %v1972_v39, -1e+30 }
 0x6ec   : > { %v1982_v42 = vsel %vm1981_vm2, %v1980_v43, -inf }
 0x6ed   : > { %1983 = vmax.xlane.f32.xlu1 %v1982_v42 }
 0x776   : > { %v1984_v44 = vpop.xlane.xlu1 %1983 }
 0x777   : > { %v1985_v45 = vsub.f32 %v1980_v43, %v1984_v44 }
 0x779   : > { %v1986_v46 = vmul.f32 1.442695, %v1985_v45 }
 0x77b   : > { %2520 = vpow2.f32 %v1986_v46 }
 0x788   : > { %v2521_v47 = vpop.eup %2520 }
 0x789   : > { %v1988_v48 = vsel %vm1981_vm2, %v2521_v47, 0.0 }
 0x78a   : > { %1989 = vadd.xlane.f32.xlu0 %v1988_v48 }
 0x7a0   : > { %2076 = vrot.lane.b32.xlu0 %v2737_v4, %s3072_s6 }
 0x7a4   : > { %2187 = vrot.lane.b32.xlu0 %v850_v20, %s3072_s6 }
 0x813   : > { %v1990_v49 = vpop.xlane.xlu0 %1989 }
 0x814   : > { %2522 = vrcp.f32 %v1990_v49 }
 0x815   : > { %2524 = vtanh.f32 %v1972_v39 }
 0x817   : > { %v2077_v59 = vpop.permute.xlu0 %2076 }
 0x81b   : > { %v2188_v12 = vpop.permute.xlu0 %2187 }
 0x821   : > { %v2523_v51 = vpop.eup %2522 }
 0x822   : > { %v1992_v54 = vmul.f32 %v2523_v51, %v2521_v47  ;;  %v2525_v55 = vpop.eup %2524 }
 0x824   : > { %v1994_v56 = vsel %vm2954_vm1, %v1992_v54, %v2525_v55 }
 0x825   : > { %v1997_v57 = vadd.f32 %v1996_v53, %v1994_v56 }
 0x827   : > { %2476 = vmatpush3.msk.msra.mxu1 %vm1457_vm8, %v1997_v57  ;;  %vm2110_vm8 = vcmask 125952  }
 0x828   : > { %2478 = vmatmul.mubr.msk.f32.vlgmr.msra.gmra.mxu1 %vm1453_vm9, %v1998_v58  ;;  %2480 = vmatprep.subr.mxu1 %v2537_v41 }
 0x829   : > { %2482 = vmatprep.mubr.msk.f32.mxu1 %vm2538_vm6, %v2537_v41  ;;  %vm2091_vm6 = vcmask 48128  }
 0x8e8   : > { %v2071_v60 = vpop.f32.mrf.mxu1 }
 0x8e9   : > { %v2079_v61 = vsub.f32 %v2071_v60, %v2077_v59 }
 0x8ea   : > { %v2479_v62 = vpop.f32.mrf.mxu1 }
 0x8eb   : > { %2081 = vrot.lane.b32.xlu1 %v2079_v61, %s2543_s10 }
 0x8ef   : > { %2085 = vrot.lane.b32.xlu1 %v2071_v60, %s2543_s10 }
 0x913   : > { %2201 = vadd.xlane.f32.xlu1 %v2200_v3 }
 0x924   : > { %2103 = vrot.lane.b32.xlu1 %v2859_v52, %s2544_s2 }
 0x928   : > { %2107 = vrot.lane.b32.xlu1 %v1994_v56, %s2545_s0 }
 0x95d   : > { %v2082_v41 = vpop.permute.xlu1 %2081 }
 0x95e   : > { %v2089_v5 = vsel %vm2088_vm5, %v2071_v60, %v2082_v41 }
 0x961   : > { %v2086_v6 = vpop.permute.xlu1 %2085 }
 0x962   : > { %v2090_v7 = vsel %vm1453_vm9, %v2089_v5, %v2086_v6  ;;  %vm2203_vm9 = vcmp.eq.s32.totalorder %v2947_v35, 0 }
 0x963   : > { %v2092_v8 = vsel %vm2091_vm6, %v2090_v7, 0.0 }
 0x964   : > { %v2093_v9 = vadd.f32 %v2092_v8, %v2737_v4 }
 0x966   : > { %2095 = vst.msk [vmem:[%s3026_s24] sm:$0xff] %vm2094_vm7, %v2093_v9  ;;  %2481 = vmatpush3.msra.mxu1 %v2093_v9 }
 0x967   : > { %2483 = vmatmul.mubr.msk.f32.vlgmr.msra.gmra.mxu1 %vm853_vm4, %v2112_v10  ;;  %vm2204_vm4 = vcmp.eq.s32.totalorder %v2947_v35, 1 }
 0x99c   : > { %v2202_v52 = vpop.xlane.xlu1 %2201 }
 0x99d   : > { %v2205_v18 = vsel %vm2204_vm4, %v2202_v52, 0.0 }
 0x9a0   : > { %v2104_v11 = vpop.permute.xlu1 %2103 }
 0x9a1   : > { %2106 = vst.msk [vmem:[%s3028_s26] sm:$0xff] %vm1306_vm10, %v2104_v11  ;;  %vm2100_vm10 = vcmask 60416  }
 0x9a4   : > { %v2108_v4 = vpop.permute.xlu1 %2107 }
 0x9a5   : > { %2111 = vst.msk [vmem:[%s3029_s27] sm:$0xf] %vm2110_vm8, %v2108_v4 }
 0xa27   : > { %v2182_v13 = vpop.f32.mrf.mxu1 }
 0xa28   : > { %v2190_v14 = vsub.f32 %v2182_v13, %v2188_v12 }
 0xa29   : > { %v2484_v15 = vpop.f32.mrf.mxu1 }
 0xa2a   : > { %v2191_v16 = vmul.f32 %v2190_v14, %v2190_v14 }
 0xa2c   : > { %v2193_v17 = vsel %vm2192_vm3, %v2191_v16, 0.0 }
 0xa2d   : > { %2194 = vadd.xlane.f32.xlu0 %v2193_v17 }
 0xa43   : > { %2097 = vrot.lane.b32.xlu0 %v1994_v56, %s2546_s9 }
 0xab6   : > { %v2195_v19 = vpop.xlane.xlu0 %2194 }
 0xab7   : > { %v2206_v20 = vsel %vm2203_vm9, %v2195_v19, %v2205_v18 }
 0xab8   : > { %2207 = vst [vmem:[%s2708_s29] sm:$0xf] %v2206_v20 }
 0xaba   : > { %v2098_v21 = vpop.permute.xlu0 %2097 }
 0xabb   : > { %2101 = vst.msk [vmem:[%s3027_s25] sm:$0xf] %vm2100_vm10, %v2098_v21 }
 0xabc PF: > { %s39_s8 = sadd.s32 1, %s2532_s8  }
 0xabd   : > { %p36_p5 = scmp.ge.s32.totalorder %s39_s8, 4  }
 0xabf   :  { %38 = sbr.rel (!%p36_p5) target bundleno = 14 (0xe), region = 182 }

</bundles_post_ra>
